<compile_context>
chip_gen: v6e
topology: v6e:2x2x1
jax: 0.10.0
libtpu: 0.0.40
codegen_flags: <defaults>
</compile_context>

<pallas_src>
import functools
import math

import jax
import jax.numpy as jnp
from jax.experimental import pallas as pl
from jax.experimental.pallas import tpu as pltpu

BN_EPS = 1e-5


# ----------------------------- kernel helpers -----------------------------

def _finalize_moments(col_sum, col_sq, g_ref, inv_count):
    """Per-column sums -> per-channel mean / E[x^2], broadcast back per column.

    g_ref (if present) is the block-diagonal "same output channel" matrix with
    inv_count already folded in, so a single MXU dot both reduces over each
    channel's s*s columns and broadcasts the result back (no lane reshapes).
    """
    if g_ref is None:                         # s == 1: one column per channel
        return col_sum * inv_count, col_sq * inv_count
    tn = col_sum.shape[1]
    stacked = jnp.concatenate(                # one 8-sublane LHS, one MXU call
        [col_sum, col_sq, jnp.zeros((6, tn), jnp.float32)], axis=0)
    red = jnp.dot(stacked, g_ref[...], preferred_element_type=jnp.float32)
    return red[0:1, :], red[1:2, :]


def _activate(y, act):
    if act == "relu":
        return jnp.maximum(y, 0.0)
    # sigmoid: keep exp and the reciprocal on the EUP slot (frees VALU slots).
    return pl.reciprocal(1.0 + jnp.exp(-y), approx=True)


# ----------------------------- Pallas kernels -----------------------------

def _convt_bn_act_resident_kernel(*refs, inv_count, eps, act, ss):
    """Single-pass kernel: the whole M dimension is resident in VMEM.

    refs = (a, w, gamma, beta[, g], out)
      a:     (M, Cin)   f32  activations (cast to bf16 in-kernel for the MXU)
      w:     (Cin, TN)  bf16 weight column tile, columns ordered (cout, di, dj)
      gamma: (1, TN)    f32  BN gamma expanded per column
      beta:  (1, TN)    f32  BN beta expanded per column
      g:     (TN, TN)   f32  same-channel matrix * 1/(M*s*s)   (only when s > 1)
      out:   (M, TN)    f32  normalized + activated output tile
    """
    if ss > 1:
        a_ref, w_ref, gamma_ref, beta_ref, g_ref, o_ref = refs
    else:
        a_ref, w_ref, gamma_ref, beta_ref, o_ref = refs
        g_ref = None

    y = jnp.dot(a_ref[...].astype(jnp.bfloat16), w_ref[...],
                preferred_element_type=jnp.float32)

    # Training-mode batch statistics per output channel.
    # TODO(synk): var = E[y^2] - mean^2 can cancel badly when |mean| >> std; a
    # centered second pass would be needed for tighter agreement with torch.
    col_sum = jnp.sum(y, axis=0, keepdims=True)           # (1, TN)
    col_sq = jnp.sum(y * y, axis=0, keepdims=True)        # (1, TN)
    mean, ex2 = _finalize_moments(col_sum, col_sq, g_ref, inv_count)
    var = ex2 - mean * mean                                # biased (torch BN train)
    scale = jax.lax.rsqrt(var + eps) * gamma_ref[...]
    shift = beta_ref[...] - mean * scale
    o_ref[...] = _activate(y * scale + shift, act)


def _convt_bn_act_tiled_kernel(*refs, inv_count, eps, act, ss):
    """Two-pass kernel over grid (n_tile, phase, m_tile) for large M.

    phase 0: GEMM each (m_tile, TN) slab, accumulate per-column sum / sum-sq in a
             VMEM scratch; finalize per-channel scale/shift at the last m step.
    phase 1: recompute the (cheap, K=Cin) GEMM, apply scale/shift + activation
             and store the output slab.

    refs = (a, w, gamma, beta[, g], out, stats)
      stats: (8, TN) f32 scratch; rows 0/1 = running col_sum / col_sq,
             rows 2/3 = finalized scale / shift.
    """
    if ss > 1:
        a_ref, w_ref, gamma_ref, beta_ref, g_ref, o_ref, stats_ref = refs
    else:
        a_ref, w_ref, gamma_ref, beta_ref, o_ref, stats_ref = refs
        g_ref = None

    phase = pl.program_id(1)
    m = pl.program_id(2)
    last_m = pl.num_programs(2) - 1

    y = jnp.dot(a_ref[...].astype(jnp.bfloat16), w_ref[...],
                preferred_element_type=jnp.float32)

    @pl.when(jnp.logical_and(phase == 0, m == 0))
    def _():
        stats_ref[...] = jnp.zeros_like(stats_ref)

    @pl.when(phase == 0)
    def _():
        tn = y.shape[1]
        upd = jnp.concatenate(
            [jnp.sum(y, axis=0, keepdims=True),
             jnp.sum(y * y, axis=0, keepdims=True),
             jnp.zeros((6, tn), jnp.float32)], axis=0)
        stats_ref[...] += upd

    @pl.when(jnp.logical_and(phase == 0, m == last_m))
    def _():
        mean, ex2 = _finalize_moments(stats_ref[0:1, :], stats_ref[1:2, :],
                                      g_ref, inv_count)
        var = ex2 - mean * mean
        scale = jax.lax.rsqrt(var + eps) * gamma_ref[...]
        shift = beta_ref[...] - mean * scale
        stats_ref[2:3, :] = scale
        stats_ref[3:4, :] = shift

    @pl.when(phase == 1)
    def _():
        o_ref[...] = _activate(y * stats_ref[2:3, :] + stats_ref[3:4, :], act)


# ----------------------------- tiling heuristics -----------------------------

def _tpu_topology():
    """(per-core VMEM bytes, #TensorCores per chip), with safe fallbacks."""
    vmem = 128 << 20
    try:
        vmem = int(pltpu.get_tpu_info().vmem_capacity_bytes)
    except Exception:
        pass
    cores = 1
    try:
        kind = jax.devices()[0].device_kind.lower()
        if any(t in kind for t in ("v7", "v5p", "v4")):
            cores = 2                                   # megacore parts
    except Exception:
        pass
    return vmem, cores


def _pick_tile_n(N, ss, num_cores):
    """Lane-dense (mult. of 128), channel-aligned (mult. of s*s) tile dividing N."""
    unit = (ss * 128) // math.gcd(ss, 128)              # lcm(s*s, 128)
    if N % unit != 0:
        return N                                         # single full-N block
    cands = [d for d in range(unit, N + 1, unit) if N % d == 0]
    if num_cores >= 2:
        # Megacore: keep >=2 'parallel' grid points so both TensorCores get work.
        multi = [d for d in cands if N // d >= 2]
        # TODO(synk): when N is a single lane-dense tile (e.g. N=128) one v7x TC
        # stays idle; an M split with cross-core partial BN stats would fix it.
        return max(multi) if multi else N
    # Single TensorCore (v5e/v6e): wide tiles fill the 256-wide MXU and cut
    # grid-step overhead; cap around 512 lanes to keep the weight tile small.
    small = [d for d in cands if d <= 512]
    return max(small) if small else min(cands)


def _pick_m_tile(M, Cin, tile_n, budget_bytes, max_m_rows=None):
    """Largest row tile dividing M (multiple of 8) whose per-step VMEM fits."""
    def step_bytes(mt):
        return (2 * mt * Cin * 4            # f32 activation tile (double-buffered)
                + 4 * mt * tile_n * 4       # f32 out tile (dbl-buf) + materialized y
                + 2 * Cin * tile_n * 2      # bf16 weight tile
                + 2 * tile_n * tile_n * 4   # channel-group matrix
                + 64 * tile_n * 4)          # stats scratch + per-column vectors
    cap = M if max_m_rows is None else max_m_rows
    if M % 8 != 0:
        # TODO(synk): ragged M would need padding to tile; keep it resident.
        return M
    if M <= cap and step_bytes(M) <= budget_bytes:
        return M
    best = 8
    for mt in range(8, M, 8):
        if M % mt == 0 and mt <= cap and step_bytes(mt) <= budget_bytes:
            best = mt
    return best


def _group_matrix(tile_n, ss, inv_count):
    """(tile_n, tile_n): inv_count where two columns share an output channel."""
    idx = jnp.arange(tile_n)
    same = (idx[:, None] // ss) == (idx[None, :] // ss)
    return jnp.where(same, jnp.float32(inv_count), jnp.float32(0.0))


# ----------------------------- wrapper -----------------------------

def decoder_module_forward(x, w, b, gamma, beta, *, stride, activation="relu",
                           max_m_rows=None):
    """DecoderModule forward.

    x:     (B, Cin, H, W)      f32, NCHW (torch layout)
    w:     (Cin, Cout, s, s)   f32, torch ConvTranspose2d weight layout
    b:     (Cout,)             ConvTranspose2d bias — exactly cancelled by the
                               training-mode BatchNorm mean subtraction, ignored.
    gamma: (Cout,)             BatchNorm2d weight
    beta:  (Cout,)             BatchNorm2d bias
    Returns (B, Cout, H*s, W*s) f32. BatchNorm uses batch statistics (training
    mode of a freshly constructed torch module).
    """
    del b  # per-channel constant; removed exactly by the BN mean subtraction
    B, Cin, H, W = x.shape
    s = stride
    ss = s * s
    Cout = w.shape[1]
    N = Cout * ss
    M = B * H * W
    inv_count = 1.0 / float(M * ss)

    # Layout glue (XLA): NCHW -> per-pixel rows (M, Cin); torch ConvT weight ->
    # (Cin, Cout*s*s) columns ordered (cout, di, dj); per-channel vectors per column.
    # TODO(synk): on v5e these transposes are ~2 extra HBM passes; an in-kernel
    # strided-DMA output layout would remove them.
    a = jnp.transpose(x, (0, 2, 3, 1)).reshape(M, Cin)     # stays f32; cast in-kernel
    w2 = w.reshape(Cin, N).astype(jnp.bfloat16)            # MXU precision trade-off
    gamma_cols = jnp.repeat(gamma.astype(jnp.float32), ss).reshape(1, N)
    beta_cols = jnp.repeat(beta.astype(jnp.float32), ss).reshape(1, N)

    vmem_cap, num_cores = _tpu_topology()
    tile_n = _pick_tile_n(N, ss, num_cores)
    m_tile = _pick_m_tile(M, Cin, tile_n, budget_bytes=vmem_cap // 2,
                          max_m_rows=max_m_rows)
    n_tiles = N // tile_n
    m_tiles = M // m_tile

    step_vmem = (2 * m_tile * Cin * 4 + 4 * m_tile * tile_n * 4
                 + 2 * Cin * tile_n * 2 + 2 * tile_n * tile_n * 4
                 + 64 * tile_n * 4)
    vmem_limit = int(min(vmem_cap - (2 << 20), max(32 << 20, 2 * step_vmem)))

    operands = [a, w2, gamma_cols, beta_cols]

    if m_tiles == 1:
        # Full-M-resident single pass.
        # TODO(synk): the grid-invariant a/g blocks could be single-buffered
        # (pipeline_mode=pl.Buffered(1)) to reclaim VMEM on v7x.
        kernel = functools.partial(_convt_bn_act_resident_kernel,
                                   inv_count=inv_count, eps=BN_EPS,
                                   act=activation, ss=ss)
        in_specs = [
            pl.BlockSpec((M, Cin), lambda j: (0, 0)),        # activations (resident)
            pl.BlockSpec((Cin, tile_n), lambda j: (0, j)),   # weight column tile
            pl.BlockSpec((1, tile_n), lambda j: (0, j)),     # gamma
            pl.BlockSpec((1, tile_n), lambda j: (0, j)),     # beta
        ]
        if ss > 1:
            operands.append(_group_matrix(tile_n, ss, inv_count))
            in_specs.append(pl.BlockSpec((tile_n, tile_n), lambda j: (0, 0)))
        y = pl.pallas_call(
            kernel,
            out_shape=jax.ShapeDtypeStruct((M, N), jnp.float32),
            grid=(n_tiles,),
            in_specs=in_specs,
            out_specs=pl.BlockSpec((M, tile_n), lambda j: (0, j)),
            compiler_params=pltpu.CompilerParams(
                dimension_semantics=("parallel",),
                vmem_limit_bytes=vmem_limit),
        )(*operands)
    else:
        # Two-pass tiled BatchNorm (stats sweep + normalize sweep over M tiles).
        kernel = functools.partial(_convt_bn_act_tiled_kernel,
                                   inv_count=inv_count, eps=BN_EPS,
                                   act=activation, ss=ss)
        in_specs = [
            pl.BlockSpec((m_tile, Cin), lambda j, p, m: (m, 0)),
            pl.BlockSpec((Cin, tile_n), lambda j, p, m: (0, j)),
            pl.BlockSpec((1, tile_n), lambda j, p, m: (0, j)),
            pl.BlockSpec((1, tile_n), lambda j, p, m: (0, j)),
        ]
        if ss > 1:
            operands.append(_group_matrix(tile_n, ss, inv_count))
            in_specs.append(pl.BlockSpec((tile_n, tile_n), lambda j, p, m: (0, 0)))
        # Output index map: during the stats phase (p == 0) stay parked on block
        # (0, j) so no garbage is written back; the normalize phase (p == 1)
        # walks the real (m, j) blocks and overwrites block (0, j) first.
        y = pl.pallas_call(
            kernel,
            out_shape=jax.ShapeDtypeStruct((M, N), jnp.float32),
            grid=(n_tiles, 2, m_tiles),
            in_specs=in_specs,
            out_specs=pl.BlockSpec((m_tile, tile_n), lambda j, p, m: (m * p, j)),
            scratch_shapes=[pltpu.VMEM((8, tile_n), jnp.float32)],
            compiler_params=pltpu.CompilerParams(
                dimension_semantics=("parallel", "arbitrary", "arbitrary"),
                vmem_limit_bytes=vmem_limit),
        )(*operands)

    # Pixel shuffle of the finished output: (b,h,w,(co,di,dj)) -> NCHW.
    y = y.reshape(B, H, W, Cout, s, s)
    y = jnp.transpose(y, (0, 3, 1, 4, 2, 5)).reshape(B, Cout, H * s, W * s)
    return y


# ----------------------------- pure-JAX reference -----------------------------

def decoder_module_reference(x, w, b, gamma, beta, *, stride, activation="relu"):
    s = stride
    t = jnp.einsum('bchw,cokl->bohwkl', x, w)            # (B,Cout,H,W,s,s)
    t = jnp.transpose(t, (0, 1, 2, 4, 3, 5))
    B, Cout, H, _, W, _ = t.shape
    y = t.reshape(B, Cout, H * s, W * s) + b[None, :, None, None]
    mean = jnp.mean(y, axis=(0, 2, 3), keepdims=True)
    var = jnp.mean((y - mean) ** 2, axis=(0, 2, 3), keepdims=True)
    y = ((y - mean) * jax.lax.rsqrt(var + BN_EPS)
         * gamma[None, :, None, None] + beta[None, :, None, None])
    if activation == "relu":
        return jnp.maximum(y, 0.0)
    return 1.0 / (1.0 + jnp.exp(-y))


# ----------------------------- main -----------------------------

if __name__ == "__main__":
    key = jax.random.PRNGKey(0)

    # Config 1: relu, stride=2 — mirrors a mid-decoder block of the VAE:
    # DecoderModule(128, 64, stride=2), input (2, 128, 14, 14) -> (2, 64, 28, 28).
    B, Cin, H, W, Cout, s = 2, 128, 14, 14, 64, 2
    k1, k2, k3, key = jax.random.split(key, 4)
    x = jax.random.normal(k1, (B, Cin, H, W), jnp.float32)
    w = 0.05 * jax.random.normal(k2, (Cin, Cout, s, s), jnp.float32)
    b = 0.05 * jax.random.normal(k3, (Cout,), jnp.float32)
    gamma = jnp.ones((Cout,), jnp.float32)    # fresh torch BatchNorm2d
    beta = jnp.zeros((Cout,), jnp.float32)

    fwd = jax.jit(functools.partial(decoder_module_forward,
                                    stride=s, activation="relu"))
    out = jax.block_until_ready(fwd(x, w, b, gamma, beta))
    assert out.shape == (B, Cout, H * s, W * s) and out.dtype == jnp.float32
    ref = decoder_module_reference(x, w, b, gamma, beta, stride=s,
                                   activation="relu")
    assert jnp.allclose(out, ref, atol=5e-2, rtol=5e-2), \
        float(jnp.max(jnp.abs(out - ref)))

    # Config 1b: same layer through the two-pass tiled-BN path (forced M tiling,
    # the path large-M layers take on v7x's 64 MiB VMEM).
    fwd_tiled = jax.jit(functools.partial(decoder_module_forward, stride=s,
                                          activation="relu", max_m_rows=64))
    out_t = jax.block_until_ready(fwd_tiled(x, w, b, gamma, beta))
    assert jnp.allclose(out_t, ref, atol=5e-2, rtol=5e-2), \
        float(jnp.max(jnp.abs(out_t - ref)))

    # Config 2: sigmoid, stride=1 — other activation + s==1 (no group matrix) path.
    B2, Cin2, H2, W2, Cout2, s2 = 2, 32, 8, 8, 128, 1
    k1, k2, k3, key = jax.random.split(key, 4)
    x2 = jax.random.normal(k1, (B2, Cin2, H2, W2), jnp.float32)
    w2 = 0.1 * jax.random.normal(k2, (Cin2, Cout2, s2, s2), jnp.float32)
    b2 = 0.1 * jax.random.normal(k3, (Cout2,), jnp.float32)
    gamma2 = jnp.ones((Cout2,), jnp.float32)
    beta2 = jnp.zeros((Cout2,), jnp.float32)

    fwd2 = jax.jit(functools.partial(decoder_module_forward,
                                     stride=s2, activation="sigmoid"))
    out2 = jax.block_until_ready(fwd2(x2, w2, b2, gamma2, beta2))
    assert out2.shape == (B2, Cout2, H2 * s2, W2 * s2)
    ref2 = decoder_module_reference(x2, w2, b2, gamma2, beta2, stride=s2,
                                    activation="sigmoid")
    assert jnp.allclose(out2, ref2, atol=5e-2, rtol=5e-2), \
        float(jnp.max(jnp.abs(out2 - ref2)))

    print("KERNEL_OK")
</pallas_src>

<mosaic_0001>
module attributes {stable_mosaic.version = 11 : i64} {
  func.func @_convt_bn_act_resident_kernel(%arg0: i32, %arg1: memref<392x128xf32, #tpu.memory_space<vmem>>, %arg2: memref<128x256xbf16, #tpu.memory_space<vmem>>, %arg3: memref<1x256xf32, #tpu.memory_space<vmem>>, %arg4: memref<1x256xf32, #tpu.memory_space<vmem>>, %arg5: memref<256x256xf32, #tpu.memory_space<vmem>>, %arg6: memref<392x256xf32, #tpu.memory_space<vmem>>) attributes {dimension_semantics = [#tpu.dimension_semantics<parallel>], iteration_bounds = array<i64: 1>, scalar_prefetch = 0 : i64, scratch_operands = 0 : i64, tpu.core_type = #tpu.core_type<tc>, window_params = [{pipeline_mode = #tpu.pipeline_mode<synchronous>, transform_indices = @transform_0, window_bounds = array<i64: 392, 128>}, {transform_indices = @transform_1, window_bounds = array<i64: 128, 256>}, {transform_indices = @transform_2, window_bounds = array<i64: 1, 256>}, {transform_indices = @transform_3, window_bounds = array<i64: 1, 256>}, {pipeline_mode = #tpu.pipeline_mode<synchronous>, transform_indices = @transform_4, window_bounds = array<i64: 256, 256>}, {transform_indices = @transform_5, window_bounds = array<i64: 392, 256>}]} {
    %c0 = arith.constant 0 : index
    %c0_0 = arith.constant 0 : index
    %0 = vector.load %arg1[%c0, %c0_0] : memref<392x128xf32, #tpu.memory_space<vmem>>, vector<392x128xf32>
    %1 = arith.truncf %0 : vector<392x128xf32> to vector<392x128xbf16>
    %c0_1 = arith.constant 0 : index
    %c0_2 = arith.constant 0 : index
    %2 = vector.load %arg2[%c0_1, %c0_2] : memref<128x256xbf16, #tpu.memory_space<vmem>>, vector<128x256xbf16>
    %cst = arith.constant dense<0.000000e+00> : vector<392x256xf32>
    %3 = tpu.matmul %1, %2, %cst {dimension_numbers = #tpu.dot_dimension_numbers<[1], [0], [0], [1], [0, 0, 1, 1], [], []>} : vector<392x128xbf16>, vector<128x256xbf16>, vector<392x256xf32> -> vector<392x256xf32>
    %cst_3 = arith.constant dense<0.000000e+00> : vector<256xf32>
    %4 = vector.multi_reduction <add>, %3, %cst_3 [0] : vector<392x256xf32> to vector<256xf32>
    %5 = vector.shape_cast %4 : vector<256xf32> to vector<1x256xf32>
    %6 = arith.mulf %3, %3 : vector<392x256xf32>
    %cst_4 = arith.constant dense<0.000000e+00> : vector<256xf32>
    %7 = vector.multi_reduction <add>, %6, %cst_4 [0] : vector<392x256xf32> to vector<256xf32>
    %8 = vector.shape_cast %7 : vector<256xf32> to vector<1x256xf32>
    %cst_5 = arith.constant 0.000000e+00 : f32
    %9 = vector.broadcast %cst_5 : f32 to vector<6x256xf32>
    %10 = tpu.concatenate %5, %8, %9 in 0 : vector<1x256xf32>, vector<1x256xf32>, vector<6x256xf32> -> vector<8x256xf32>
    %c0_6 = arith.constant 0 : index
    %c0_7 = arith.constant 0 : index
    %11 = vector.load %arg5[%c0_6, %c0_7] : memref<256x256xf32, #tpu.memory_space<vmem>>, vector<256x256xf32>
    %cst_8 = arith.constant dense<0.000000e+00> : vector<8x256xf32>
    %12 = tpu.matmul %10, %11, %cst_8 {dimension_numbers = #tpu.dot_dimension_numbers<[1], [0], [0], [1], [0, 0, 1, 1], [], []>} : vector<8x256xf32>, vector<256x256xf32>, vector<8x256xf32> -> vector<8x256xf32>
    %13 = vector.extract_strided_slice %12 {offsets = [0, 0], sizes = [1, 256], strides = [1, 1]} : vector<8x256xf32> to vector<1x256xf32>
    %14 = vector.extract_strided_slice %12 {offsets = [1, 0], sizes = [1, 256], strides = [1, 1]} : vector<8x256xf32> to vector<1x256xf32>
    %15 = arith.mulf %13, %13 : vector<1x256xf32>
    %16 = arith.subf %14, %15 : vector<1x256xf32>
    %cst_9 = arith.constant 9.99999974E-6 : f32
    %17 = vector.broadcast %cst_9 : f32 to vector<1x256xf32>
    %18 = arith.addf %16, %17 : vector<1x256xf32>
    %19 = math.rsqrt %18 : vector<1x256xf32>
    %c0_10 = arith.constant 0 : index
    %c0_11 = arith.constant 0 : index
    %20 = vector.load %arg3[%c0_10, %c0_11] : memref<1x256xf32, #tpu.memory_space<vmem>>, vector<1x256xf32>
    %21 = arith.mulf %19, %20 : vector<1x256xf32>
    %c0_12 = arith.constant 0 : index
    %c0_13 = arith.constant 0 : index
    %22 = vector.load %arg4[%c0_12, %c0_13] : memref<1x256xf32, #tpu.memory_space<vmem>>, vector<1x256xf32>
    %23 = arith.mulf %13, %21 : vector<1x256xf32>
    %24 = arith.subf %22, %23 : vector<1x256xf32>
    %25 = vector.broadcast %21 : vector<1x256xf32> to vector<392x256xf32>
    %26 = arith.mulf %3, %25 : vector<392x256xf32>
    %27 = vector.broadcast %24 : vector<1x256xf32> to vector<392x256xf32>
    %28 = arith.addf %26, %27 : vector<392x256xf32>
    %cst_14 = arith.constant 0.000000e+00 : f32
    %29 = vector.broadcast %cst_14 : f32 to vector<392x256xf32>
    %30 = arith.maximumf %28, %29 : vector<392x256xf32>
    %c0_15 = arith.constant 0 : index
    %c0_16 = arith.constant 0 : index
    %31 = vector.load %arg6[%c0_15, %c0_16] : memref<392x256xf32, #tpu.memory_space<vmem>>, vector<392x256xf32>
    tpu.vector_store %arg6[%c0_15, %c0_16], %30 {strides = array<i32>} : memref<392x256xf32, #tpu.memory_space<vmem>>, vector<392x256xf32>,
    return
  }
  func.func @transform_0(%arg0: i32) -> (i32, i32) {
    %c0_i32 = arith.constant 0 : i32
    %c0_i32_0 = arith.constant 0 : i32
    %c0_i32_1 = arith.constant 0 : i32
    return %c0_i32, %c0_i32_0 : i32, i32
  }
  func.func @transform_1(%arg0: i32) -> (i32, i32) {
    %c0_i32 = arith.constant 0 : i32
    %c0_i32_0 = arith.constant 0 : i32
    return %c0_i32, %arg0 : i32, i32
  }
  func.func @transform_2(%arg0: i32) -> (i32, i32) {
    %c0_i32 = arith.constant 0 : i32
    %c0_i32_0 = arith.constant 0 : i32
    return %c0_i32, %arg0 : i32, i32
  }
  func.func @transform_3(%arg0: i32) -> (i32, i32) {
    %c0_i32 = arith.constant 0 : i32
    %c0_i32_0 = arith.constant 0 : i32
    return %c0_i32, %arg0 : i32, i32
  }
  func.func @transform_4(%arg0: i32) -> (i32, i32) {
    %c0_i32 = arith.constant 0 : i32
    %c0_i32_0 = arith.constant 0 : i32
    %c0_i32_1 = arith.constant 0 : i32
    return %c0_i32, %c0_i32_0 : i32, i32
  }
  func.func @transform_5(%arg0: i32) -> (i32, i32) {
    %c0_i32 = arith.constant 0 : i32
    %c0_i32_0 = arith.constant 0 : i32
    return %c0_i32, %arg0 : i32, i32
  }
}

</mosaic_0001>

<bundles_post_ra>
// kernel: decoder_module_forward.1
= control target key start
LH: loop header
LB: loop body
LE: loop exit
PB: predicated region body
PF: predicated region fallthrough
CT: control target
= control target key end

     0   :  { %v1462_v1 = vmov 0   ;;  %vm786_vm0 = vcmask 1040384   ;;  %vm789_vm1 = vcmask 1041408   ;;  %s3542_s1 = inlined_call_operand.vmem [shape: bf16[128,256], index: 1, kind: input, shape index: {}]   ;;  %s3543_s0 = inlined_call_operand.vmem [shape: f32[392,128], index: 0, kind: input, shape index: {}]   ;;  %s3544_s4 = inlined_call_operand.vmem [shape: f32[256,256], index: 4, kind: input, shape index: {}]   ;;  %s3545_s2 = inlined_call_operand.vmem [shape: f32[1,256], index: 2, kind: input, shape index: {}]   ;;  %s3546_s3 = inlined_call_operand.vmem [shape: f32[1,256], index: 3, kind: input, shape index: {}]   ;;  %s3547_s5 = inlined_call_operand.vmem [shape: f32[392,256], index: 5, kind: output, shape index: {}]  }
   0x1   :  { %v1434_v0 = vld [vmem:[%s3542_s1 + $0x74] ss:$8 sps:$4 sm:$0xff]   ;;  %223 = vmatprep.mubr.bf16.mxu0 %v1462_v1  ;;  %353 = vmatprep.mubr.bf16.mxu1 %v1462_v1  ;;  %v1436_v2 = vld [vmem:[%s3542_s1 + $0x70] ss:$8 sps:$4 sm:$0xff]   ;;  %v1437_v3 = vld [vmem:[%s3542_s1 + $0x64] ss:$8 sps:$4 sm:$0xff]  }
   0x2   :  { %191 = vmatprep.subr.bf16.mxu0 %v1434_v0  ;;  %1416 = vmatprep.subr.bf16.mxu1 %v1434_v0  ;;  %v1439_v4 = vld [vmem:[%s3542_s1 + $0x60] ss:$8 sps:$4 sm:$0xff]   ;;  %v1440_v5 = vld [vmem:[%s3542_s1 + $0x54] ss:$8 sps:$4 sm:$0xff]   ;;  %v1442_v6 = vld [vmem:[%s3542_s1 + $0x50] ss:$8 sps:$4 sm:$0xff]  }
   0x3   :  { %192 = vmatpush1.bf16.msra.mxu0 %v1436_v2  ;;  %1424 = vmatpush1.bf16.msra.mxu1 %v1436_v2  ;;  %v1443_v7 = vld [vmem:[%s3542_s1 + $0x44] ss:$8 sps:$4 sm:$0xff]   ;;  %v1445_v8 = vld [vmem:[%s3542_s1 + $0x40] ss:$8 sps:$4 sm:$0xff]   ;;  %v1446_v9 = vld [vmem:[%s3542_s1 + $0x34] ss:$8 sps:$4 sm:$0xff]  }
   0x4   :  { %193 = vmatprep.subr.bf16.mxu0 %v1437_v3  ;;  %1417 = vmatprep.subr.bf16.mxu1 %v1437_v3  ;;  %v1448_v10 = vld [vmem:[%s3542_s1 + $0x30] ss:$8 sps:$4 sm:$0xff]   ;;  %v1449_v11 = vld [vmem:[%s3542_s1 + $0x24] ss:$8 sps:$4 sm:$0xff]   ;;  %v1451_v12 = vld [vmem:[%s3542_s1 + $0x20] ss:$8 sps:$4 sm:$0xff]  }
   0x5   :  { %v1452_v13 = vld [vmem:[%s3542_s1 + $0x14] ss:$8 sps:$4 sm:$0xff]   ;;  %v1454_v14 = vld [vmem:[%s3542_s1 + $0x10] ss:$8 sps:$4 sm:$0xff]   ;;  %v1455_v15 = vld [vmem:[%s3542_s1 + $0x4] ss:$8 sps:$4 sm:$0xff]  }
   0x6   :  { %v1457_v16 = vld [vmem:[%s3542_s1] ss:$8 sps:$4 sm:$0xff]   ;;  %v47_v19 = vld [vmem:[%s3543_s0 + $0xd0] sm:$0xff]  ;;  %v48_v20 = vld [vmem:[%s3543_s0 + $0xd8] sm:$0xff] }
   0x7   :  { %194 = vmatpush1.bf16.msra.mxu0 %v1439_v4  ;;  %1425 = vmatpush1.bf16.msra.mxu1 %v1439_v4  ;;  %v21_v17 = vld [vmem:[%s3543_s0] sm:$0xff]  ;;  %v22_v18 = vld [vmem:[%s3543_s0 + $0x8] sm:$0xff]  ;;  %v83_v22 = vpack.c.bf16 %v48_v20, %v47_v19  ;;  %v23_v23 = vld [vmem:[%s3543_s0 + $0x10] sm:$0xff] }
   0x8   :  { %195 = vmatprep.subr.bf16.mxu0 %v1440_v5  ;;  %1418 = vmatprep.subr.bf16.mxu1 %v1440_v5  ;;  %v70_v21 = vpack.c.bf16 %v22_v18, %v21_v17  ;;  %v24_v24 = vld [vmem:[%s3543_s0 + $0x18] sm:$0xff]  ;;  %v49_v25 = vld [vmem:[%s3543_s0 + $0xe0] sm:$0xff]  ;;  %v50_v26 = vld [vmem:[%s3543_s0 + $0xe8] sm:$0xff] }
   0x9   :  { %v71_v27 = vpack.c.bf16 %v24_v24, %v23_v23  ;;  %v84_v28 = vpack.c.bf16 %v50_v26, %v49_v25  ;;  %v25_v29 = vld [vmem:[%s3543_s0 + $0x20] sm:$0xff]  ;;  %v26_v30 = vld [vmem:[%s3543_s0 + $0x28] sm:$0xff]  ;;  %v51_v31 = vld [vmem:[%s3543_s0 + $0xf0] sm:$0xff] }
   0xa   :  { %v52_v32 = vld [vmem:[%s3543_s0 + $0xf8] sm:$0xff]  ;;  %v72_v33 = vpack.c.bf16 %v26_v30, %v25_v29  ;;  %v27_v35 = vld [vmem:[%s3543_s0 + $0x30] sm:$0xff]  ;;  %v53_v37 = vld [vmem:[%s3543_s0 + $0x100] sm:$0xff] }
   0xb   :  { %196 = vmatpush1.bf16.msra.mxu0 %v1442_v6  ;;  %1426 = vmatpush1.bf16.msra.mxu1 %v1442_v6  ;;  %v85_v34 = vpack.c.bf16 %v52_v32, %v51_v31  ;;  %v28_v36 = vld [vmem:[%s3543_s0 + $0x38] sm:$0xff]  ;;  %v54_v38 = vld [vmem:[%s3543_s0 + $0x108] sm:$0xff]  ;;  %v29_v41 = vld [vmem:[%s3543_s0 + $0x40] sm:$0xff] }
   0xc   :  { %197 = vmatprep.subr.bf16.mxu0 %v1443_v7  ;;  %1419 = vmatprep.subr.bf16.mxu1 %v1443_v7  ;;  %v73_v39 = vpack.c.bf16 %v28_v36, %v27_v35  ;;  %v86_v40 = vpack.c.bf16 %v54_v38, %v53_v37  ;;  %v30_v42 = vld [vmem:[%s3543_s0 + $0x48] sm:$0xff]  ;;  %v55_v43 = vld [vmem:[%s3543_s0 + $0x110] sm:$0xff]  ;;  %v56_v44 = vld [vmem:[%s3543_s0 + $0x118] sm:$0xff] }
   0xd   :  { %v74_v45 = vpack.c.bf16 %v30_v42, %v29_v41  ;;  %v87_v46 = vpack.c.bf16 %v56_v44, %v55_v43  ;;  %v31_v47 = vld [vmem:[%s3543_s0 + $0x50] sm:$0xff]  ;;  %v32_v48 = vld [vmem:[%s3543_s0 + $0x58] sm:$0xff]  ;;  %v57_v49 = vld [vmem:[%s3543_s0 + $0x120] sm:$0xff] }
   0xe   :  { %v58_v50 = vld [vmem:[%s3543_s0 + $0x128] sm:$0xff]  ;;  %v75_v51 = vpack.c.bf16 %v32_v48, %v31_v47  ;;  %v33_v53 = vld [vmem:[%s3543_s0 + $0x60] sm:$0xff]  ;;  %v59_v55 = vld [vmem:[%s3543_s0 + $0x130] sm:$0xff] }
   0xf   :  { %198 = vmatpush1.bf16.msra.mxu0 %v1445_v8  ;;  %1427 = vmatpush1.bf16.msra.mxu1 %v1445_v8  ;;  %v88_v52 = vpack.c.bf16 %v58_v50, %v57_v49  ;;  %v34_v54 = vld [vmem:[%s3543_s0 + $0x68] sm:$0xff]  ;;  %v60_v56 = vld [vmem:[%s3543_s0 + $0x138] sm:$0xff]  ;;  %v35_v59 = vld [vmem:[%s3543_s0 + $0x70] sm:$0xff] }
  0x10   :  { %199 = vmatprep.subr.bf16.mxu0 %v1446_v9  ;;  %1420 = vmatprep.subr.bf16.mxu1 %v1446_v9  ;;  %v76_v57 = vpack.c.bf16 %v34_v54, %v33_v53  ;;  %v89_v58 = vpack.c.bf16 %v60_v56, %v59_v55  ;;  %v36_v60 = vld [vmem:[%s3543_s0 + $0x78] sm:$0xff]  ;;  %v61_v61 = vld [vmem:[%s3543_s0 + $0x140] sm:$0xff]  ;;  %v62_v62 = vld [vmem:[%s3543_s0 + $0x148] sm:$0xff] }
  0x11   :  { %v77_v63 = vpack.c.bf16 %v36_v60, %v35_v59  ;;  %v90_v0 = vpack.c.bf16 %v62_v62, %v61_v61  ;;  %v37_v2 = vld [vmem:[%s3543_s0 + $0x80] sm:$0xff]  ;;  %v38_v3 = vld [vmem:[%s3543_s0 + $0x88] sm:$0xff]  ;;  %v63_v4 = vld [vmem:[%s3543_s0 + $0x150] sm:$0xff] }
  0x12   :  { %v64_v5 = vld [vmem:[%s3543_s0 + $0x158] sm:$0xff]  ;;  %v78_v6 = vpack.c.bf16 %v38_v3, %v37_v2  ;;  %v39_v8 = vld [vmem:[%s3543_s0 + $0x90] sm:$0xff]  ;;  %v45_v25 = vld [vmem:[%s3543_s0 + $0xc0] sm:$0xff] }
  0x13   :  { %200 = vmatpush1.bf16.msra.mxu0 %v1448_v10  ;;  %1428 = vmatpush1.bf16.msra.mxu1 %v1448_v10  ;;  %v91_v7 = vpack.c.bf16 %v64_v5, %v63_v4  ;;  %v40_v9 = vld [vmem:[%s3543_s0 + $0x98] sm:$0xff]  ;;  %v65_v10 = vld [vmem:[%s3543_s0 + $0x160] sm:$0xff]  ;;  %v43_v20 = vld [vmem:[%s3543_s0 + $0xb0] sm:$0xff] }
  0x14   :  { %201 = vmatprep.subr.bf16.mxu0 %v1449_v11  ;;  %1421 = vmatprep.subr.bf16.mxu1 %v1449_v11  ;;  %v66_v11 = vld [vmem:[%s3543_s0 + $0x168] sm:$0xff]  ;;  %v68_v17 = vld [vmem:[%s3543_s0 + $0x178] sm:$0xff]  ;;  %v822_v29 = vld [vmem:[%s3544_s4 + $0xf0] sm:$0xff] }
  0x15   :  { %v46_v26 = vld [vmem:[%s3543_s0 + $0xc8] sm:$0xff]  ;;  %v820_v30 = vld [vmem:[%s3544_s4 + $0xe0] sm:$0xff]  ;;  %v819_v31 = vld [vmem:[%s3544_s4 + $0xd8] sm:$0xff] }
  0x16   :  { %v818_v32 = vld [vmem:[%s3544_s4 + $0xd0] sm:$0xff]  ;;  %v815_v35 = vld [vmem:[%s3544_s4 + $0xb8] sm:$0xff]  ;;  %v813_v37 = vld [vmem:[%s3544_s4 + $0xa8] sm:$0xff] }
  0x17   :  { %202 = vmatpush1.bf16.msra.mxu0 %v1451_v12  ;;  %1429 = vmatpush1.bf16.msra.mxu1 %v1451_v12  ;;  %v79_v12 = vpack.c.bf16 %v40_v9, %v39_v8  ;;  %v814_v36 = vld [vmem:[%s3544_s4 + $0xb0] sm:$0xff]  ;;  %v812_v38 = vld [vmem:[%s3544_s4 + $0xa0] sm:$0xff]  ;;  %v809_v41 = vld [vmem:[%s3544_s4 + $0x88] sm:$0xff] }
  0x18   :  { %203 = vmatprep.subr.bf16.mxu0 %v1452_v13  ;;  %1422 = vmatprep.subr.bf16.mxu1 %v1452_v13  ;;  %v92_v13 = vpack.c.bf16 %v66_v11, %v65_v10  ;;  %v808_v42 = vld [vmem:[%s3544_s4 + $0x80] sm:$0xff]  ;;  %v807_v43 = vld [vmem:[%s3544_s4 + $0x78] sm:$0xff]  ;;  %v806_v44 = vld [vmem:[%s3544_s4 + $0x70] sm:$0xff] }
  0x19   :  { %v803_v47 = vld [vmem:[%s3544_s4 + $0x58] sm:$0xff]  ;;  %v802_v48 = vld [vmem:[%s3544_s4 + $0x50] sm:$0xff]  ;;  %v801_v49 = vld [vmem:[%s3544_s4 + $0x48] sm:$0xff] }
  0x1a   :  { %v800_v50 = vld [vmem:[%s3544_s4 + $0x40] sm:$0xff]  ;;  %v797_v55 = vld [vmem:[%s3544_s4 + $0x28] sm:$0xff]  ;;  %v795_v59 = vld [vmem:[%s3544_s4 + $0x18] sm:$0xff] }
  0x1b   :  { %204 = vmatpush1.bf16.msra.mxu0 %v1454_v14  ;;  %1430 = vmatpush1.bf16.msra.mxu1 %v1454_v14  ;;  %v41_v14 = vld [vmem:[%s3543_s0 + $0xa0] sm:$0xff]  ;;  %v794_v60 = vld [vmem:[%s3544_s4 + $0x10] sm:$0xff]  ;;  %v855_v4 = vld [vmem:[%s3544_s4 + $0x1f8] sm:$0xff] }
  0x1c   :  { %205 = vmatprep.subr.bf16.mxu0 %v1455_v15  ;;  %1423 = vmatprep.subr.bf16.mxu1 %v1455_v15  ;;  %v42_v15 = vld [vmem:[%s3543_s0 + $0xa8] sm:$0xff]  ;;  %v796_v56 = vld [vmem:[%s3544_s4 + $0x20] sm:$0xff]  ;;  %v854_v5 = vld [vmem:[%s3544_s4 + $0x1f0] sm:$0xff] }
  0x1d   :  { %v80_v18 = vpack.c.bf16 %v42_v15, %v41_v14  ;;  %v853_v8 = vld [vmem:[%s3544_s4 + $0x1e8] sm:$0xff]  ;;  %v852_v9 = vld [vmem:[%s3544_s4 + $0x1e0] sm:$0xff] }
  0x1f   :  { %206 = vmatpush1.bf16.msra.mxu0 %v1457_v16  ;;  %1431 = vmatpush1.bf16.msra.mxu1 %v1457_v16  ;;  %v67_v16 = vld [vmem:[%s3543_s0 + $0x170] sm:$0xff] }
  0x20   :  { %v93_v19 = vpack.c.bf16 %v68_v17, %v67_v16  ;;  %v849_v16 = vld [vmem:[%s3544_s4 + $0x1c8] sm:$0xff]  ;;  %v848_v17 = vld [vmem:[%s3544_s4 + $0x1c0] sm:$0xff] }
  0x22   :  { %224 = vmatmul.mubr.bf16.vlgmr.msra.gmra.mxu0 %v70_v21  ;;  %354 = vmatmul.mubr.bf16.vlgmr.msra.gmra.mxu1 %v83_v22  ;;  %v44_v21 = vld [vmem:[%s3543_s0 + $0xb8] sm:$0xff]  ;;  %v69_v22 = vld [vmem:[%s3543_s0 + $0x180] sm:$0xff] }
  0x23   :  { %233 = vmatprep.mubr.bf16.mxu0 %v1462_v1  ;;  %363 = vmatprep.mubr.bf16.mxu1 %v1462_v1  ;;  %v81_v23 = vpack.c.bf16 %v44_v21, %v43_v20  ;;  %v94_v24 = vpack.c.bf16 %v69_v22, %v69_v22  ;;  %v847_v20 = vld [vmem:[%s3544_s4 + $0x1b8] sm:$0xff]  ;;  %v846_v21 = vld [vmem:[%s3544_s4 + $0x1b0] sm:$0xff] }
  0x2a   :  { %234 = vmatmul.mubr.bf16.gmra.mxu0 %v71_v27  ;;  %364 = vmatmul.mubr.bf16.gmra.mxu1 %v84_v28  ;;  %v82_v27 = vpack.c.bf16 %v46_v26, %v45_v25  ;;  %v823_v28 = vld [vmem:[%s3544_s4 + $0xf8] sm:$0xff]  ;;  %v844_v25 = vld [vmem:[%s3544_s4 + $0x1a0] sm:$0xff] }
  0x2b   :  { %243 = vmatprep.mubr.bf16.mxu0 %v1462_v1  ;;  %373 = vmatprep.mubr.bf16.mxu1 %v1462_v1 }
  0x2c   :  { %856 = vmatprep.subr.mxu1 %v823_v28  ;;  %v843_v28 = vld [vmem:[%s3544_s4 + $0x198] sm:$0xff] }
  0x2d   :  { %857 = vmatpush1.msra.mxu1 %v822_v29  ;;  %v842_v29 = vld [vmem:[%s3544_s4 + $0x190] sm:$0xff] }
  0x32   :  { %244 = vmatmul.mubr.bf16.gmra.mxu0 %v72_v33  ;;  %374 = vmatmul.mubr.bf16.gmra.mxu1 %v85_v34  ;;  %v817_v33 = vld [vmem:[%s3544_s4 + $0xc8] sm:$0xff]  ;;  %v816_v34 = vld [vmem:[%s3544_s4 + $0xc0] sm:$0xff] }
  0x33   :  { %253 = vmatprep.mubr.bf16.mxu0 %v1462_v1  ;;  %383 = vmatprep.mubr.bf16.mxu1 %v1462_v1 }
  0x3a   :  { %254 = vmatmul.mubr.bf16.gmra.mxu0 %v73_v39  ;;  %384 = vmatmul.mubr.bf16.gmra.mxu1 %v86_v40  ;;  %v811_v39 = vld [vmem:[%s3544_s4 + $0x98] sm:$0xff]  ;;  %v810_v40 = vld [vmem:[%s3544_s4 + $0x90] sm:$0xff] }
  0x3b   :  { %263 = vmatprep.mubr.bf16.mxu0 %v1462_v1  ;;  %393 = vmatprep.mubr.bf16.mxu1 %v1462_v1 }
  0x42   :  { %264 = vmatmul.mubr.bf16.gmra.mxu0 %v74_v45  ;;  %394 = vmatmul.mubr.bf16.gmra.mxu1 %v87_v46  ;;  %v805_v45 = vld [vmem:[%s3544_s4 + $0x68] sm:$0xff]  ;;  %v804_v46 = vld [vmem:[%s3544_s4 + $0x60] sm:$0xff] }
  0x43   :  { %273 = vmatprep.mubr.bf16.mxu0 %v1462_v1  ;;  %403 = vmatprep.mubr.bf16.mxu1 %v1462_v1 }
  0x4a   :  { %274 = vmatmul.mubr.bf16.gmra.mxu0 %v75_v51  ;;  %404 = vmatmul.mubr.bf16.gmra.mxu1 %v88_v52  ;;  %v799_v51 = vld [vmem:[%s3544_s4 + $0x38] sm:$0xff]  ;;  %v798_v52 = vld [vmem:[%s3544_s4 + $0x30] sm:$0xff] }
  0x4b   :  { %283 = vmatprep.mubr.bf16.mxu0 %v1462_v1  ;;  %413 = vmatprep.mubr.bf16.mxu1 %v1462_v1 }
  0x52   :  { %284 = vmatmul.mubr.bf16.gmra.mxu0 %v76_v57  ;;  %414 = vmatmul.mubr.bf16.gmra.mxu1 %v89_v58 }
  0x53   :  { %293 = vmatprep.mubr.bf16.mxu0 %v1462_v1  ;;  %423 = vmatprep.mubr.bf16.mxu1 %v1462_v1 }
  0x5a   :  { %294 = vmatmul.mubr.bf16.gmra.mxu0 %v77_v63  ;;  %424 = vmatmul.mubr.bf16.gmra.mxu1 %v90_v0  ;;  %v793_v63 = vld [vmem:[%s3544_s4 + $0x8] sm:$0xff]  ;;  %v792_v0 = vld [vmem:[%s3544_s4] sm:$0xff] }
  0x5b   :  { %303 = vmatprep.mubr.bf16.mxu0 %v1462_v1  ;;  %433 = vmatprep.mubr.bf16.mxu1 %v1462_v1 }
  0x62   :  { %304 = vmatmul.mubr.bf16.gmra.mxu0 %v78_v6  ;;  %434 = vmatmul.mubr.bf16.gmra.mxu1 %v91_v7 }
  0x63   :  { %313 = vmatprep.mubr.bf16.mxu0 %v1462_v1  ;;  %443 = vmatprep.mubr.bf16.mxu1 %v1462_v1 }
  0x6a   :  { %314 = vmatmul.mubr.bf16.gmra.mxu0 %v79_v12  ;;  %444 = vmatmul.mubr.bf16.gmra.mxu1 %v92_v13  ;;  %v851_v12 = vld [vmem:[%s3544_s4 + $0x1d8] sm:$0xff]  ;;  %v850_v13 = vld [vmem:[%s3544_s4 + $0x1d0] sm:$0xff] }
  0x6b   :  { %323 = vmatprep.mubr.bf16.mxu0 %v1462_v1  ;;  %453 = vmatprep.mubr.bf16.mxu1 %v1462_v1 }
  0x72   :  { %324 = vmatmul.mubr.bf16.gmra.mxu0 %v80_v18  ;;  %454 = vmatmul.mubr.bf16.gmra.mxu1 %v93_v19 }
  0x73   :  { %333 = vmatprep.mubr.bf16.mxu0 %v1462_v1  ;;  %463 = vmatprep.mubr.bf16.mxu1 %v1462_v1 }
  0x7a   :  { %334 = vmatmul.mubr.bf16.gmra.mxu0 %v81_v23  ;;  %464 = vmatmul.mubr.bf16.gmra.mxu1 %v94_v24  ;;  %v845_v24 = vld [vmem:[%s3544_s4 + $0x1a8] sm:$0xff] }
  0x7b   :  { %343 = vmatprep.mubr.bf16.mxu0 %v1462_v1  ;;  %v821_v1 = vld [vmem:[%s3544_s4 + $0xe8] sm:$0xff] }
  0x7c   :  { %858 = vmatprep.subr.mxu1 %v821_v1 }
  0x7d   :  { %859 = vmatpush1.msra.mxu1 %v820_v30 }
  0x7e   :  { %860 = vmatprep.subr.mxu1 %v819_v31  ;;  %v841_v31 = vld [vmem:[%s3544_s4 + $0x188] sm:$0xff] }
  0x7f   :  { %861 = vmatpush1.msra.mxu1 %v818_v32  ;;  %v840_v32 = vld [vmem:[%s3544_s4 + $0x180] sm:$0xff] }
  0x80   :  { %862 = vmatprep.subr.mxu1 %v817_v33 }
  0x81   :  { %863 = vmatpush1.msra.mxu1 %v816_v34 }
  0x82   :  { %344 = vmatmul.mubr.bf16.gmra.mxu0 %v82_v27  ;;  %864 = vmatprep.subr.mxu1 %v815_v35  ;;  %v839_v35 = vld [vmem:[%s3544_s4 + $0x178] sm:$0xff] }
  0x83   :  { %865 = vmatpush1.msra.mxu1 %v814_v36  ;;  %v838_v36 = vld [vmem:[%s3544_s4 + $0x170] sm:$0xff] }
  0x84   :  { %866 = vmatprep.subr.mxu1 %v813_v37 }
  0x85   :  { %867 = vmatpush1.msra.mxu1 %v812_v38 }
  0x86   :  { %868 = vmatprep.subr.mxu1 %v811_v39  ;;  %v837_v39 = vld [vmem:[%s3544_s4 + $0x168] sm:$0xff] }
  0x87   :  { %869 = vmatpush1.msra.mxu1 %v810_v40  ;;  %v836_v40 = vld [vmem:[%s3544_s4 + $0x160] sm:$0xff] }
  0x88   :  { %870 = vmatprep.subr.mxu1 %v809_v41 }
  0x89   :  { %871 = vmatpush1.msra.mxu1 %v808_v42 }
  0x8a   :  { %872 = vmatprep.subr.mxu1 %v807_v43  ;;  %v835_v43 = vld [vmem:[%s3544_s4 + $0x158] sm:$0xff] }
  0x8b   :  { %873 = vmatpush1.msra.mxu1 %v806_v44  ;;  %v834_v44 = vld [vmem:[%s3544_s4 + $0x150] sm:$0xff] }
  0x8c   :  { %874 = vmatprep.subr.mxu1 %v805_v45 }
  0x8d   :  { %875 = vmatpush1.msra.mxu1 %v804_v46 }
  0x8e   :  { %876 = vmatprep.subr.mxu1 %v803_v47  ;;  %v833_v47 = vld [vmem:[%s3544_s4 + $0x148] sm:$0xff] }
  0x8f   :  { %877 = vmatpush1.msra.mxu1 %v802_v48  ;;  %v832_v48 = vld [vmem:[%s3544_s4 + $0x140] sm:$0xff] }
  0x90   :  { %878 = vmatprep.subr.mxu1 %v801_v49 }
  0x91   :  { %879 = vmatpush1.msra.mxu1 %v800_v50 }
  0x92   :  { %880 = vmatprep.subr.mxu1 %v799_v51  ;;  %v831_v51 = vld [vmem:[%s3544_s4 + $0x138] sm:$0xff] }
  0x93   :  { %881 = vmatpush1.msra.mxu1 %v798_v52  ;;  %v830_v52 = vld [vmem:[%s3544_s4 + $0x130] sm:$0xff] }
  0x94   :  { %882 = vmatprep.subr.mxu1 %v797_v55 }
  0x95   :  { %883 = vmatpush1.msra.mxu1 %v796_v56 }
  0x96   :  { %884 = vmatprep.subr.mxu1 %v795_v59  ;;  %v829_v59 = vld [vmem:[%s3544_s4 + $0x128] sm:$0xff] }
  0x97   :  { %885 = vmatpush1.msra.mxu1 %v794_v60  ;;  %v828_v60 = vld [vmem:[%s3544_s4 + $0x120] sm:$0xff] }
  0x98   :  { %886 = vmatprep.subr.mxu1 %v793_v63  ;;  %v827_v63 = vld [vmem:[%s3544_s4 + $0x118] sm:$0xff] }
  0x99   :  { %887 = vmatpush1.msra.mxu1 %v792_v0  ;;  %v826_v0 = vld [vmem:[%s3544_s4 + $0x110] sm:$0xff] }
  0x9a   :  { %888 = vmatprep.subr.mxu1 %v855_v4 }
  0x9b   :  { %889 = vmatpush2.msra.mxu1 %v854_v5 }
  0x9c   :  { %890 = vmatprep.subr.mxu1 %v853_v8  ;;  %v825_v8 = vld [vmem:[%s3544_s4 + $0x108] sm:$0xff] }
  0x9d   :  { %891 = vmatpush2.msra.mxu1 %v852_v9  ;;  %v824_v9 = vld [vmem:[%s3544_s4 + $0x100] sm:$0xff] }
  0x9e   :  { %892 = vmatprep.subr.mxu1 %v851_v12 }
  0x9f   :  { %893 = vmatpush2.msra.mxu1 %v850_v13 }
  0xa0   :  { %894 = vmatprep.subr.mxu1 %v849_v16 }
  0xa1   :  { %895 = vmatpush2.msra.mxu1 %v848_v17 }
  0xa2   :  { %896 = vmatprep.subr.mxu1 %v847_v20 }
  0xa3   :  { %897 = vmatpush2.msra.mxu1 %v846_v21 }
  0xa4   :  { %898 = vmatprep.subr.mxu1 %v845_v24 }
  0xa5   :  { %899 = vmatpush2.msra.mxu1 %v844_v25 }
  0xa6   :  { %900 = vmatprep.subr.mxu1 %v843_v28 }
  0xa7   :  { %901 = vmatpush2.msra.mxu1 %v842_v29 }
  0xa8   :  { %902 = vmatprep.subr.mxu1 %v841_v31 }
  0xa9   :  { %903 = vmatpush2.msra.mxu1 %v840_v32 }
  0xaa   :  { %904 = vmatprep.subr.mxu1 %v839_v35 }
  0xab   :  { %905 = vmatpush2.msra.mxu1 %v838_v36 }
  0xac   :  { %906 = vmatprep.subr.mxu1 %v837_v39 }
  0xad   :  { %907 = vmatpush2.msra.mxu1 %v836_v40 }
  0xae   :  { %908 = vmatprep.subr.mxu1 %v835_v43 }
  0xaf   :  { %909 = vmatpush2.msra.mxu1 %v834_v44 }
  0xb0   :  { %910 = vmatprep.subr.mxu1 %v833_v47 }
  0xb1   :  { %911 = vmatpush2.msra.mxu1 %v832_v48 }
  0xb2   :  { %912 = vmatprep.subr.mxu1 %v831_v51 }
  0xb3   :  { %913 = vmatpush2.msra.mxu1 %v830_v52 }
  0xb4   :  { %914 = vmatprep.subr.mxu1 %v829_v59 }
  0xb5   :  { %915 = vmatpush2.msra.mxu1 %v828_v60 }
  0xb6   :  { %916 = vmatprep.subr.mxu1 %v827_v63 }
  0xb7   :  { %917 = vmatpush2.msra.mxu1 %v826_v0 }
  0xb8   :  { %918 = vmatprep.subr.mxu1 %v825_v8 }
  0xb9   :  { %919 = vmatpush2.msra.mxu1 %v824_v9 }
  0xe2   :  { %v1792_v53 = vpop.f32.mrf.mxu0  ;;  %v1794_v54 = vpop.f32.mrf.mxu1 }
  0xe3   :  { %3618 = vst [vmem:[#allocation2_spill] sm:$0xff] %v1792_v53  ;;  %v580_v51 = vmul.f32 %v1792_v53, %v1792_v53 }
  0xe4   :  { %v1802_v57 = vpop.f32.mrf.mxu0  ;;  %v1804_v58 = vpop.f32.mrf.mxu1 }
  0xe5   :  { %3619 = vst [vmem:[#allocation3_spill] sm:$0xff] %v1802_v57  ;;  %v581_v60 = vmul.f32 %v1802_v57, %v1802_v57 }
  0xe6   :  { %v1812_v61 = vpop.f32.mrf.mxu0  ;;  %v1814_v62 = vpop.f32.mrf.mxu1 }
  0xe7   :  { %3620 = vst [vmem:[#allocation4_spill] sm:$0xff] %v1812_v61  ;;  %v582_v43 = vmul.f32 %v1812_v61, %v1812_v61  ;;  %v472_v52 = vadd.f32 %v1812_v61, %v1792_v53 }
  0xe8   :  { %v1822_v2 = vpop.f32.mrf.mxu0  ;;  %v1824_v3 = vpop.f32.mrf.mxu1 }
  0xe9   :  { %3621 = vst [vmem:[#allocation5_spill] sm:$0xff] %v1822_v2  ;;  %v583_v44 = vmul.f32 %v1822_v2, %v1822_v2  ;;  %v678_v9 = vadd.f32 %v582_v43, %v580_v51 }
  0xea   :  { %v1832_v6 = vpop.f32.mrf.mxu0  ;;  %v1834_v7 = vpop.f32.mrf.mxu1 }
  0xeb   :  { %3622 = vst [vmem:[#allocation6_spill] sm:$0xff] %v1832_v6  ;;  %v584_v59 = vmul.f32 %v1832_v6, %v1832_v6  ;;  %v732_v53 = vadd.f32 %v583_v44, %v581_v60 }
  0xec   :  { %v1842_v10 = vpop.f32.mrf.mxu0  ;;  %v1844_v11 = vpop.f32.mrf.mxu1 }
  0xed   :  { %3623 = vst [vmem:[#allocation7_spill] sm:$0xff] %v1842_v10  ;;  %v585_v63 = vmul.f32 %v1842_v10, %v1842_v10 }
  0xee   :  { %v1852_v14 = vpop.f32.mrf.mxu0  ;;  %v1854_v15 = vpop.f32.mrf.mxu1 }
  0xef   :  { %3624 = vst [vmem:[#allocation8_spill] sm:$0xff] %v1852_v14  ;;  %v586_v61 = vmul.f32 %v1852_v14, %v1852_v14 }
  0xf0   :  { %v1862_v18 = vpop.f32.mrf.mxu0  ;;  %v1864_v19 = vpop.f32.mrf.mxu1 }
  0xf1   :  { %3625 = vst [vmem:[#allocation9_spill] sm:$0xff] %v1862_v18 }
  0xf2   :  { %v1872_v22 = vpop.f32.mrf.mxu0  ;;  %v1874_v23 = vpop.f32.mrf.mxu1 }
  0xf3   :  { %3626 = vst [vmem:[#allocation10_spill] sm:$0xff] %v1872_v22  ;;  %v588_v51 = vmul.f32 %v1872_v22, %v1872_v22 }
  0xf4   :  { %v1882_v26 = vpop.f32.mrf.mxu0  ;;  %v1884_v27 = vpop.f32.mrf.mxu1 }
  0xf5   :  { %3627 = vst [vmem:[#allocation11_spill] sm:$0xff] %v1882_v26  ;;  %3628 = vst [vmem:[#allocation12_spill] sm:$0xff] %v1884_v27 }
  0xf6   :  { %v1892_v1 = vpop.f32.mrf.mxu0  ;;  %v1894_v30 = vpop.f32.mrf.mxu1 }
  0xf7   :  { %3629 = vst [vmem:[#allocation13_spill] sm:$0xff] %v1892_v1 }
  0xf8   :  { %v1902_v33 = vpop.f32.mrf.mxu0  ;;  %v1904_v34 = vpop.f32.mrf.mxu1 }
  0xf9   :  { %3630 = vst [vmem:[#allocation14_spill] sm:$0xff] %v1902_v33  ;;  %3631 = vst [vmem:[#allocation15_spill] sm:$0xff] %v1904_v34 }
  0xfa   :  { %v1912_v37 = vpop.f32.mrf.mxu0  ;;  %v1914_v38 = vpop.f32.mrf.mxu1 }
  0xfb   :  { %3632 = vst [vmem:[#allocation16_spill] sm:$0xff] %v1912_v37 }
  0xfc   :  { %v1922_v41 = vpop.f32.mrf.mxu0  ;;  %v1924_v42 = vpop.f32.mrf.mxu1 }
  0xfd   :  { %3633 = vst [vmem:[#allocation17_spill] sm:$0xff] %v1922_v41  ;;  %3634 = vst [vmem:[#allocation18_spill] sm:$0xff] %v1924_v42 }
  0xfe   :  { %v1932_v45 = vpop.f32.mrf.mxu0  ;;  %v1934_v46 = vpop.f32.mrf.mxu1 }
  0xff   :  { %3635 = vst [vmem:[#allocation19_spill] sm:$0xff] %v1932_v45 }
 0x100   :  { %v1942_v49 = vpop.f32.mrf.mxu0  ;;  %v1944_v50 = vpop.f32.mrf.mxu1 }
 0x101   :  { %3636 = vst [vmem:[#allocation20_spill] sm:$0xff] %v1942_v49  ;;  %3637 = vst [vmem:[#allocation21_spill] sm:$0xff] %v1944_v50 }
 0x102   :  { %v1952_v55 = vpop.f32.mrf.mxu0  ;;  %v1954_v56 = vpop.f32.mrf.mxu1 }
 0x103   :  { %3638 = vst [vmem:[#allocation22_spill] sm:$0xff] %v1952_v55 }
 0x104   :  { %v1968_v4 = vpop.f32.mrf.mxu0  ;;  %v1970_v5 = vpop.f32.mrf.mxu1 }
 0x105   :  { %3639 = vst [vmem:[#allocation23_spill] sm:$0xff] %v1968_v4  ;;  %3640 = vst [vmem:[#allocation24_spill] sm:$0xff] %v1970_v5 }
 0x106   :  { %v1978_v12 = vpop.f32.mrf.mxu0  ;;  %v1980_v13 = vpop.f32.mrf.mxu1 }
 0x107   :  { %3641 = vst [vmem:[#allocation25_spill] sm:$0xff] %v1978_v12 }
 0x108   :  { %v1982_v16 = vpop.f32.mrf.mxu0  ;;  %v1984_v17 = vpop.f32.mrf.mxu1 }
 0x109   :  { %3642 = vst [vmem:[#allocation26_spill] sm:$0xff] %v1982_v16  ;;  %3643 = vst [vmem:[#allocation27_spill] sm:$0xff] %v1984_v17 }
 0x10a   :  { %v1986_v20 = vpop.f32.mrf.mxu0  ;;  %v1988_v21 = vpop.f32.mrf.mxu1 }
 0x10b   :  { %3644 = vst [vmem:[#allocation28_spill] sm:$0xff] %v1986_v20 }
 0x10c   :  { %v1990_v24 = vpop.f32.mrf.mxu0  ;;  %v1992_v25 = vpop.f32.mrf.mxu1 }
 0x10d   :  { %3645 = vst [vmem:[#allocation29_spill] sm:$0xff] %v1990_v24  ;;  %3646 = vst [vmem:[#allocation30_spill] sm:$0xff] %v1992_v25  ;;  %v679_v25 = vadd.f32 %v678_v9, %v584_v59  ;;  %v591_v9 = vmul.f32 %v1902_v33, %v1902_v33 }
 0x10e   :  { %v1994_v28 = vpop.f32.mrf.mxu0  ;;  %v1996_v29 = vpop.f32.mrf.mxu1 }
 0x10f   :  { %3647 = vst [vmem:[#allocation31_spill] sm:$0xff] %v1994_v28  ;;  %3648 = vst [vmem:[#allocation32_spill] sm:$0xff] %v1996_v29 }
 0x110   :  { %v1998_v31 = vpop.f32.mrf.mxu0  ;;  %v2000_v32 = vpop.f32.mrf.mxu1 }
 0x111   :  { %3649 = vst [vmem:[#allocation33_spill] sm:$0xff] %v1998_v31  ;;  %3650 = vst [vmem:[#allocation34_spill] sm:$0xff] %v2000_v32 }
 0x112   :  { %v2002_v35 = vpop.f32.mrf.mxu0  ;;  %v2004_v36 = vpop.f32.mrf.mxu1 }
 0x113   :  { %3651 = vst [vmem:[#allocation35_spill] sm:$0xff] %v2002_v35  ;;  %3652 = vst [vmem:[#allocation36_spill] sm:$0xff] %v2004_v36  ;;  %v587_v36 = vmul.f32 %v1862_v18, %v1862_v18 }
 0x114   :  { %v2006_v39 = vpop.f32.mrf.mxu0  ;;  %v2008_v40 = vpop.f32.mrf.mxu1 }
 0x115   :  { %3653 = vst [vmem:[#allocation37_spill] sm:$0xff] %v2006_v39  ;;  %3654 = vst [vmem:[#allocation38_spill] sm:$0xff] %v2008_v40  ;;  %v473_v40 = vadd.f32 %v472_v52, %v1832_v6  ;;  %v733_v52 = vadd.f32 %v732_v53, %v585_v63 }
 0x116   :  { %v2014_v47 = vpop.f32.mrf.mxu0  ;;  %v2016_v48 = vpop.f32.mrf.mxu1 }
 0x117   :  { %3655 = vst [vmem:[#allocation39_spill] sm:$0xff] %v2014_v47  ;;  %3656 = vst [vmem:[#allocation40_spill] sm:$0xff] %v2016_v48  ;;  %v526_v48 = vadd.f32 %v1822_v2, %v1802_v57  ;;  %v474_v43 = vadd.f32 %v473_v40, %v1852_v14  ;;  %v589_v2 = vmul.f32 %v1882_v26, %v1882_v26 }
 0x118   :  { %v2028_v0 = vpop.f32.mrf.mxu0  ;;  %v2030_v8 = vpop.f32.mrf.mxu1  ;;  %v680_v57 = vadd.f32 %v679_v25, %v586_v61  ;;  %v734_v40 = vadd.f32 %v733_v52, %v587_v36  ;;  %v592_v25 = vmul.f32 %v1912_v37, %v1912_v37 }
 0x119   :  { %3657 = vst [vmem:[#allocation41_spill] sm:$0xff] %v2028_v0  ;;  %3658 = vst [vmem:[#allocation42_spill] sm:$0xff] %v2030_v8  ;;  %v527_v8 = vadd.f32 %v526_v48, %v1842_v10  ;;  %v475_v59 = vadd.f32 %v474_v43, %v1872_v22  ;;  %v590_v48 = vmul.f32 %v1892_v1, %v1892_v1 }
 0x11a   :  { %v2039_v32 = vpop.f32.mrf.mxu0  ;;  %v2041_v29 = vpop.f32.mrf.mxu1  ;;  %v681_v10 = vadd.f32 %v680_v57, %v588_v51  ;;  %v593_v43 = vmul.f32 %v1922_v41, %v1922_v41 }
 0x11b   :  { %3659 = vst [vmem:[#allocation43_spill] sm:$0xff] %v2039_v32  ;;  %v528_v6 = vadd.f32 %v527_v8, %v1862_v18  ;;  %v476_v61 = vadd.f32 %v475_v59, %v1892_v1  ;;  %v735_v8 = vadd.f32 %v734_v40, %v589_v2  ;;  %v595_v59 = vmul.f32 %v1942_v49, %v1942_v49 }
 0x11c   :  { %v2049_v44 = vpop.f32.mrf.mxu0  ;;  %v2051_v60 = vpop.f32.mrf.mxu1  ;;  %v682_v18 = vadd.f32 %v681_v10, %v590_v48 }
 0x11d   :  { %3660 = vst [vmem:[#allocation44_spill] sm:$0xff] %v2049_v44  ;;  %3661 = vst [vmem:[#allocation45_spill] sm:$0xff] %v2051_v60  ;;  %v529_v14 = vadd.f32 %v528_v6, %v1882_v26  ;;  %v477_v57 = vadd.f32 %v476_v61, %v1912_v37  ;;  %v594_v6 = vmul.f32 %v1932_v45, %v1932_v45 }
 0x11e   :  { %v2059_v53 = vpop.f32.mrf.mxu0  ;;  %v2061_v63 = vpop.f32.mrf.mxu1  ;;  %v736_v51 = vadd.f32 %v735_v8, %v591_v9  ;;  %v683_v26 = vadd.f32 %v682_v18, %v592_v25  ;;  %v597_v61 = vmul.f32 %v1968_v4, %v1968_v4 }
 0x11f   :  { %3662 = vst [vmem:[#allocation46_spill] sm:$0xff] %v2059_v53  ;;  %v530_v22 = vadd.f32 %v529_v14, %v1902_v33  ;;  %v478_v10 = vadd.f32 %v477_v57, %v1932_v45  ;;  %v596_v14 = vmul.f32 %v1952_v55, %v1952_v55  ;;  %v599_v57 = vmul.f32 %v1982_v16, %v1982_v16 }
 0x120   :  { %v2069_v36 = vpop.f32.mrf.mxu0  ;;  %v2071_v52 = vpop.f32.mrf.mxu1  ;;  %v737_v48 = vadd.f32 %v736_v51, %v593_v43  ;;  %v684_v33 = vadd.f32 %v683_v26, %v594_v6 }
 0x121   :  { %3663 = vst [vmem:[#allocation47_spill] sm:$0xff] %v2069_v36  ;;  %3664 = vst [vmem:[#allocation48_spill] sm:$0xff] %v2071_v52  ;;  %v531_v1 = vadd.f32 %v530_v22, %v1922_v41  ;;  %v479_v18 = vadd.f32 %v478_v10, %v1952_v55  ;;  %v598_v22 = vmul.f32 %v1978_v12, %v1978_v12 }
 0x122   :  { %v2079_v2 = vpop.f32.mrf.mxu0  ;;  %v2081_v40 = vpop.f32.mrf.mxu1  ;;  %v738_v25 = vadd.f32 %v737_v48, %v595_v59  ;;  %v685_v41 = vadd.f32 %v684_v33, %v596_v14  ;;  %v601_v10 = vmul.f32 %v1990_v24, %v1990_v24 }
 0x123   :  { %3665 = vst [vmem:[#allocation49_spill] sm:$0xff] %v2079_v2  ;;  %v532_v37 = vadd.f32 %v531_v1, %v1942_v49  ;;  %v480_v26 = vadd.f32 %v479_v18, %v1978_v12  ;;  %v600_v1 = vmul.f32 %v1986_v20, %v1986_v20  ;;  %v603_v18 = vmul.f32 %v1998_v31, %v1998_v31 }
 0x124   :  { %v2089_v9 = vpop.f32.mrf.mxu0  ;;  %v2091_v8 = vpop.f32.mrf.mxu1  ;;  %v739_v6 = vadd.f32 %v738_v25, %v597_v61  ;;  %v686_v49 = vadd.f32 %v685_v41, %v598_v22 }
 0x125   :  { %3666 = vst [vmem:[#allocation50_spill] sm:$0xff] %v2089_v9  ;;  %3667 = vst [vmem:[#allocation51_spill] sm:$0xff] %v2091_v8  ;;  %v533_v45 = vadd.f32 %v532_v37, %v1968_v4  ;;  %v481_v33 = vadd.f32 %v480_v26, %v1986_v20  ;;  %v602_v37 = vmul.f32 %v1994_v28, %v1994_v28 }
 0x126   :  { %v2099_v43 = vpop.f32.mrf.mxu0  ;;  %v2101_v51 = vpop.f32.mrf.mxu1  ;;  %v740_v14 = vadd.f32 %v739_v6, %v599_v57  ;;  %v687_v4 = vadd.f32 %v686_v49, %v600_v1  ;;  %v605_v26 = vmul.f32 %v2006_v39, %v2006_v39 }
 0x127   :  { %3668 = vst [vmem:[#allocation52_spill] sm:$0xff] %v2099_v43  ;;  %v534_v55 = vadd.f32 %v533_v45, %v1982_v16  ;;  %v482_v41 = vadd.f32 %v481_v33, %v1994_v28  ;;  %v604_v45 = vmul.f32 %v2002_v35, %v2002_v35  ;;  %v607_v33 = vmul.f32 %v2028_v0, %v2028_v0 }
 0x128   :  { %v2109_v59 = vpop.f32.mrf.mxu0  ;;  %v2111_v48 = vpop.f32.mrf.mxu1  ;;  %v741_v22 = vadd.f32 %v740_v14, %v601_v10  ;;  %v688_v16 = vadd.f32 %v687_v4, %v602_v37 }
 0x129   :  { %3669 = vst [vmem:[#allocation53_spill] sm:$0xff] %v2109_v59  ;;  %3670 = vst [vmem:[#allocation54_spill] sm:$0xff] %v2111_v48  ;;  %v535_v12 = vadd.f32 %v534_v55, %v1990_v24  ;;  %v483_v49 = vadd.f32 %v482_v41, %v2002_v35  ;;  %v606_v55 = vmul.f32 %v2014_v47, %v2014_v47 }
 0x12a   :  { %v2119_v61 = vpop.f32.mrf.mxu0  ;;  %v2121_v25 = vpop.f32.mrf.mxu1  ;;  %v742_v1 = vadd.f32 %v741_v22, %v603_v18  ;;  %v689_v24 = vadd.f32 %v688_v16, %v604_v45  ;;  %v609_v41 = vmul.f32 %v2049_v44, %v2049_v44 }
 0x12b   :  { %3671 = vst [vmem:[#allocation55_spill] sm:$0xff] %v2119_v61  ;;  %v536_v20 = vadd.f32 %v535_v12, %v1998_v31  ;;  %v484_v4 = vadd.f32 %v483_v49, %v2014_v47  ;;  %v608_v12 = vmul.f32 %v2039_v32, %v2039_v32  ;;  %v611_v49 = vmul.f32 %v2069_v36, %v2069_v36 }
 0x12c   :  { %v2129_v57 = vpop.f32.mrf.mxu0  ;;  %v2131_v6 = vpop.f32.mrf.mxu1  ;;  %v743_v37 = vadd.f32 %v742_v1, %v605_v26  ;;  %v690_v31 = vadd.f32 %v689_v24, %v606_v55 }
 0x12d   :  { %3672 = vst [vmem:[#allocation56_spill] sm:$0xff] %v2129_v57  ;;  %3673 = vst [vmem:[#allocation57_spill] sm:$0xff] %v2131_v6  ;;  %v537_v28 = vadd.f32 %v536_v20, %v2006_v39  ;;  %v485_v16 = vadd.f32 %v484_v4, %v2039_v32  ;;  %v610_v20 = vmul.f32 %v2059_v53, %v2059_v53 }
 0x12e   :  { %v2139_v10 = vpop.f32.mrf.mxu0  ;;  %v2141_v14 = vpop.f32.mrf.mxu1  ;;  %v744_v45 = vadd.f32 %v743_v37, %v607_v33  ;;  %v691_v39 = vadd.f32 %v690_v31, %v608_v12  ;;  %v613_v4 = vmul.f32 %v2089_v9, %v2089_v9 }
 0x12f   :  { %3674 = vst [vmem:[#allocation58_spill] sm:$0xff] %v2139_v10  ;;  %v538_v35 = vadd.f32 %v537_v28, %v2028_v0  ;;  %v486_v24 = vadd.f32 %v485_v16, %v2059_v53  ;;  %v612_v28 = vmul.f32 %v2079_v2, %v2079_v2  ;;  %v615_v16 = vmul.f32 %v2109_v59, %v2109_v59 }
 0x130   :  { %v2149_v18 = vpop.f32.mrf.mxu0  ;;  %v2151_v22 = vpop.f32.mrf.mxu1  ;;  %v745_v55 = vadd.f32 %v744_v45, %v609_v41  ;;  %v692_v0 = vadd.f32 %v691_v39, %v610_v20 }
 0x131   :  { %3675 = vst [vmem:[#allocation59_spill] sm:$0xff] %v2149_v18  ;;  %3676 = vst [vmem:[#allocation60_spill] sm:$0xff] %v2151_v22  ;;  %v539_v47 = vadd.f32 %v538_v35, %v2049_v44  ;;  %v487_v31 = vadd.f32 %v486_v24, %v2079_v2  ;;  %v614_v35 = vmul.f32 %v2099_v43, %v2099_v43 }
 0x132   :  { %v2159_v26 = vpop.f32.mrf.mxu0  ;;  %v2161_v1 = vpop.f32.mrf.mxu1  ;;  %v746_v12 = vadd.f32 %v745_v55, %v611_v49  ;;  %v693_v44 = vadd.f32 %v692_v0, %v612_v28  ;;  %v617_v24 = vmul.f32 %v2129_v57, %v2129_v57 }
 0x133   :  { %v540_v32 = vadd.f32 %v539_v47, %v2069_v36  ;;  %v488_v39 = vadd.f32 %v487_v31, %v2099_v43  ;;  %v616_v47 = vmul.f32 %v2119_v61, %v2119_v61  ;;  %v619_v31 = vmul.f32 %v2149_v18, %v2149_v18 }
 0x134   :  { %v2169_v33 = vpop.f32.mrf.mxu0  ;;  %v2171_v37 = vpop.f32.mrf.mxu1  ;;  %v747_v20 = vadd.f32 %v746_v12, %v613_v4  ;;  %v694_v36 = vadd.f32 %v693_v44, %v614_v35 }
 0x135   :  { %3677 = vst [vmem:[#allocation61_spill] sm:$0xff] %v2169_v33  ;;  %3678 = vst [vmem:[#allocation62_spill] sm:$0xff] %v2171_v37  ;;  %v541_v53 = vadd.f32 %v540_v32, %v2089_v9  ;;  %v489_v0 = vadd.f32 %v488_v39, %v2119_v61  ;;  %v618_v32 = vmul.f32 %v2139_v10, %v2139_v10 }
 0x136   :  { %v2179_v41 = vpop.f32.mrf.mxu0  ;;  %v2181_v45 = vpop.f32.mrf.mxu1  ;;  %v748_v28 = vadd.f32 %v747_v20, %v615_v16  ;;  %v695_v9 = vadd.f32 %v694_v36, %v616_v47  ;;  %v621_v39 = vmul.f32 %v2169_v33, %v2169_v33 }
 0x137   :  { %v542_v2 = vadd.f32 %v541_v53, %v2109_v59  ;;  %v490_v44 = vadd.f32 %v489_v0, %v2139_v10  ;;  %v620_v53 = vmul.f32 %v2159_v26, %v2159_v26 }
 0x138   :  { %v2189_v49 = vpop.f32.mrf.mxu0  ;;  %v2191_v55 = vpop.f32.mrf.mxu1  ;;  %v749_v35 = vadd.f32 %v748_v28, %v617_v24  ;;  %v696_v59 = vadd.f32 %v695_v9, %v618_v32 }
 0x139   :  { %3679 = vst [vmem:[#allocation63_spill] sm:$0xff] %v2189_v49  ;;  %3680 = vst [vmem:[#allocation64_spill] sm:$0xff] %v2191_v55  ;;  %v543_v43 = vadd.f32 %v542_v2, %v2129_v57  ;;  %v491_v36 = vadd.f32 %v490_v44, %v2159_v26  ;;  %v622_v2 = vmul.f32 %v2179_v41, %v2179_v41 }
 0x13a   :  { %v2199_v4 = vpop.f32.mrf.mxu0  ;;  %v2201_v12 = vpop.f32.mrf.mxu1  ;;  %v750_v47 = vadd.f32 %v749_v35, %v619_v31  ;;  %v623_v0 = vmul.f32 %v2189_v49, %v2189_v49  ;;  %v697_v57 = vadd.f32 %v696_v59, %v620_v53 }
 0x13b   :  { %v544_v61 = vadd.f32 %v543_v43, %v2149_v18  ;;  %v624_v9 = vmul.f32 %v2199_v4, %v2199_v4 }
 0x13c   :  { %v2209_v16 = vpop.f32.mrf.mxu0  ;;  %v2211_v20 = vpop.f32.mrf.mxu1  ;;  %v751_v43 = vadd.f32 %v750_v47, %v621_v39  ;;  %v698_v35 = vadd.f32 %v697_v57, %v622_v2 }
 0x13d   :  { %3681 = vst [vmem:[#allocation65_spill] sm:$0xff] %v2211_v20  ;;  %v545_v10 = vadd.f32 %v544_v61, %v2169_v33  ;;  %v492_v20 = vadd.f32 %v491_v36, %v2179_v41  ;;  %v625_v32 = vmul.f32 %v2209_v16, %v2209_v16 }
 0x13e   :  { %v2219_v24 = vpop.f32.mrf.mxu0  ;;  %v469_v28 = vpop.f32.mrf.mxu1  ;;  %v752_v61 = vadd.f32 %v751_v43, %v623_v0  ;;  %v699_v39 = vadd.f32 %v698_v35, %v624_v9 }
 0x13f   :  { %v546_v18 = vadd.f32 %v545_v10, %v2189_v49  ;;  %v493_v28 = vadd.f32 %v492_v20, %v2199_v4  ;;  %v626_v59 = vmul.f32 %v2219_v24, %v2219_v24 }
 0x140   :  { %v2227_v44 = vpop.f32.mrf.mxu0  ;;  %v470_v31 = vpop.f32.mrf.mxu1  ;;  %v753_v10 = vadd.f32 %v752_v61, %v625_v32 }
 0x141   :  { %3682 = vst [vmem:[#allocation66_spill] sm:$0xff] %v2227_v44  ;;  %v627_v53 = vmul.f32 %v2227_v44, %v2227_v44  ;;  %v547_v47 = vadd.f32 %v546_v18, %v2209_v16  ;;  %v494_v33 = vadd.f32 %v493_v28, %v2219_v24  ;;  %v700_v20 = vadd.f32 %v699_v39, %v626_v59 }
 0x142   :  { %v2235_v36 = vpop.f32.mrf.mxu0  ;;  %v632_v59 = vmul.f32 %v1794_v54, %v1794_v54 }
 0x143   :  { %v628_v57 = vmul.f32 %v2235_v36, %v2235_v36  ;;  %v548_v31 = vadd.f32 %v547_v47, %v2227_v44  ;;  %v495_v0 = vadd.f32 %v494_v33, %v2235_v36  ;;  %v754_v49 = vadd.f32 %v753_v10, %v627_v53 }
 0x144   :  { %v2241_v2 = vpop.f32.mrf.mxu0  ;;  %v633_v10 = vmul.f32 %v1804_v58, %v1804_v58  ;;  %v637_v44 = vmul.f32 %v1844_v11, %v1844_v11 }
 0x145   :  { %3683 = vst [vmem:[#allocation67_spill] sm:$0xff] %v2241_v2  ;;  %v629_v43 = vmul.f32 %v2241_v2, %v2241_v2  ;;  %v701_v18 = vadd.f32 %v700_v20, %v628_v57  ;;  %v549_v35 = vadd.f32 %v548_v31, %v2241_v2  ;;  %v634_v20 = vmul.f32 %v1814_v62, %v1814_v62 }
 0x146   :  { %v2247_v9 = vpop.f32.mrf.mxu0 }
 0x147   :  { %v496_v28 = vadd.f32 %v495_v0, %v2247_v9  ;;  %v630_v32 = vmul.f32 %v2247_v9, %v2247_v9  ;;  %v755_v61 = vadd.f32 %v754_v49, %v629_v43 }
 0x148   :  { %v2255_v39 = vpop.f32.mrf.mxu0 }
 0x149   :  { %3684 = vst [vmem:[#allocation68_spill] sm:$0xff] %v2255_v39  ;;  %v497_v33 = vadd.f32 %v496_v28, %v1794_v54  ;;  %v702_v47 = vadd.f32 %v701_v18, %v630_v32  ;;  %v550_v53 = vadd.f32 %v549_v35, %v2255_v39  ;;  %v631_v57 = vmul.f32 %v2255_v39, %v2255_v39 }
 0x14a   :  { %v635_v18 = vmul.f32 %v1824_v3, %v1824_v3  ;;  %v636_v35 = vmul.f32 %v1834_v7, %v1834_v7 }
 0x14b   :  { %v498_v31 = vadd.f32 %v497_v33, %v1814_v62  ;;  %v703_v0 = vadd.f32 %v702_v47, %v632_v59  ;;  %v551_v49 = vadd.f32 %v550_v53, %v1804_v58  ;;  %v756_v43 = vadd.f32 %v755_v61, %v631_v57 }
 0x14c   :  { %v638_v59 = vmul.f32 %v1854_v15, %v1854_v15  ;;  %v639_v57 = vmul.f32 %v1864_v19, %v1864_v19 }
 0x14d   :  { %v499_v28 = vadd.f32 %v498_v31, %v1834_v7  ;;  %v704_v32 = vadd.f32 %v703_v0, %v634_v20  ;;  %v552_v39 = vadd.f32 %v551_v49, %v1824_v3  ;;  %v757_v2 = vadd.f32 %v756_v43, %v633_v10 }
 0x14e   :  { %v640_v20 = vmul.f32 %v1874_v23, %v1874_v23  ;;  %v641_v43 = vmul.f32 %v1884_v27, %v1884_v27 }
 0x14f   :  { %v500_v61 = vadd.f32 %v499_v28, %v1854_v15  ;;  %v705_v33 = vadd.f32 %v704_v32, %v636_v35  ;;  %v553_v47 = vadd.f32 %v552_v39, %v1844_v11  ;;  %v758_v53 = vadd.f32 %v757_v2, %v635_v18 }
 0x150   :  { %v642_v35 = vmul.f32 %v1894_v30, %v1894_v30  ;;  %v643_v32 = vmul.f32 %v1904_v34, %v1904_v34 }
 0x151   :  { %v501_v10 = vadd.f32 %v500_v61, %v1874_v23  ;;  %v706_v31 = vadd.f32 %v705_v33, %v638_v59  ;;  %v554_v0 = vadd.f32 %v553_v47, %v1864_v19  ;;  %v759_v49 = vadd.f32 %v758_v53, %v637_v44 }
 0x152   :  { %v644_v59 = vmul.f32 %v1914_v38, %v1914_v38  ;;  %v645_v53 = vmul.f32 %v1924_v42, %v1924_v42 }
 0x153   :  { %v502_v2 = vadd.f32 %v501_v10, %v1894_v30  ;;  %v707_v39 = vadd.f32 %v706_v31, %v640_v20  ;;  %v555_v18 = vadd.f32 %v554_v0, %v1884_v27  ;;  %v760_v28 = vadd.f32 %v759_v49, %v639_v57 }
 0x154   :  { %v646_v20 = vmul.f32 %v1934_v46, %v1934_v46  ;;  %v647_v49 = vmul.f32 %v1944_v50, %v1944_v50 }
 0x155   :  { %v708_v61 = vadd.f32 %v707_v39, %v642_v35  ;;  %v503_v44 = vadd.f32 %v502_v2, %v1914_v38  ;;  %v556_v33 = vadd.f32 %v555_v18, %v1904_v34  ;;  %v761_v47 = vadd.f32 %v760_v28, %v641_v43 }
 0x156   :  { %v648_v35 = vmul.f32 %v1954_v56, %v1954_v56  ;;  %v649_v28 = vmul.f32 %v1970_v5, %v1970_v5 }
 0x157   :  { %v504_v57 = vadd.f32 %v503_v44, %v1934_v46  ;;  %v709_v10 = vadd.f32 %v708_v61, %v644_v59  ;;  %v762_v31 = vadd.f32 %v761_v47, %v643_v32  ;;  %v557_v0 = vadd.f32 %v556_v33, %v1924_v42 }
 0x158   :  { %v650_v32 = vmul.f32 %v1980_v13, %v1980_v13  ;;  %v651_v47 = vmul.f32 %v1984_v17, %v1984_v17 }
 0x159   :  { %v505_v43 = vadd.f32 %v504_v57, %v1954_v56  ;;  %v710_v2 = vadd.f32 %v709_v10, %v646_v20  ;;  %v558_v39 = vadd.f32 %v557_v0, %v1944_v50  ;;  %v763_v18 = vadd.f32 %v762_v31, %v645_v53  ;;  %v3685_v0 = vld [vmem:[#allocation30_spill] sm:$0xff] }
 0x15a   :  { %v652_v20 = vmul.f32 %v1988_v21, %v1988_v21  ;;  %v653_v50 = vmul.f32 %v3685_v0, %v3685_v0 }
 0x15b   :  { %v506_v59 = vadd.f32 %v505_v43, %v1980_v13  ;;  %v711_v61 = vadd.f32 %v710_v2, %v648_v35  ;;  %v559_v44 = vadd.f32 %v558_v39, %v1970_v5  ;;  %v764_v33 = vadd.f32 %v763_v18, %v647_v49  ;;  %v3686_v43 = vld [vmem:[#allocation32_spill] sm:$0xff]  ;;  %v3687_v5 = vld [vmem:[#allocation34_spill] sm:$0xff] }
 0x15c   :  { %v654_v35 = vmul.f32 %v3686_v43, %v3686_v43  ;;  %v655_v42 = vmul.f32 %v3687_v5, %v3687_v5 }
 0x15d   :  { %v507_v53 = vadd.f32 %v506_v59, %v1988_v21  ;;  %v712_v57 = vadd.f32 %v711_v61, %v650_v32  ;;  %v560_v10 = vadd.f32 %v559_v44, %v1984_v17  ;;  %v765_v31 = vadd.f32 %v764_v33, %v649_v28  ;;  %v3688_v59 = vld [vmem:[#allocation36_spill] sm:$0xff]  ;;  %v3689_v17 = vld [vmem:[#allocation38_spill] sm:$0xff] }
 0x15e   :  { %v656_v32 = vmul.f32 %v3688_v59, %v3688_v59  ;;  %v657_v34 = vmul.f32 %v3689_v17, %v3689_v17 }
 0x15f   :  { %v508_v49 = vadd.f32 %v507_v53, %v3686_v43  ;;  %v713_v2 = vadd.f32 %v712_v57, %v652_v20  ;;  %v561_v39 = vadd.f32 %v560_v10, %v3685_v0  ;;  %v766_v18 = vadd.f32 %v765_v31, %v651_v47  ;;  %v3690_v53 = vld [vmem:[#allocation40_spill] sm:$0xff]  ;;  %v3691_v0 = vld [vmem:[#allocation42_spill] sm:$0xff] }
 0x160   :  { %v658_v20 = vmul.f32 %v3690_v53, %v3690_v53  ;;  %v659_v27 = vmul.f32 %v3691_v0, %v3691_v0 }
 0x161   :  { %v509_v28 = vadd.f32 %v508_v49, %v3688_v59  ;;  %v714_v61 = vadd.f32 %v713_v2, %v654_v35  ;;  %v562_v44 = vadd.f32 %v561_v39, %v3687_v5  ;;  %v767_v33 = vadd.f32 %v766_v18, %v653_v50 }
 0x162   :  { %v660_v35 = vmul.f32 %v2041_v29, %v2041_v29  ;;  %v661_v18 = vmul.f32 %v2051_v60, %v2051_v60 }
 0x163   :  { %v715_v57 = vadd.f32 %v714_v61, %v656_v32  ;;  %v563_v47 = vadd.f32 %v562_v44, %v3689_v17  ;;  %v768_v10 = vadd.f32 %v767_v33, %v655_v42  ;;  %v510_v31 = vadd.f32 %v509_v28, %v3690_v53 }
 0x164   :  { %v662_v42 = vmul.f32 %v2061_v63, %v2061_v63  ;;  %v664_v33 = vmul.f32 %v2081_v40, %v2081_v40 }
 0x165   :  { %v769_v49 = vadd.f32 %v768_v10, %v657_v34  ;;  %v716_v50 = vadd.f32 %v715_v57, %v658_v20  ;;  %v564_v2 = vadd.f32 %v563_v47, %v3691_v0  ;;  %v511_v39 = vadd.f32 %v510_v31, %v2041_v29 }
 0x166   :  { %v663_v34 = vmul.f32 %v2071_v52, %v2071_v52  ;;  %v666_v31 = vmul.f32 %v2101_v51, %v2101_v51 }
 0x167   :  { %v770_v32 = vadd.f32 %v769_v49, %v659_v27  ;;  %v717_v28 = vadd.f32 %v716_v50, %v660_v35  ;;  %v565_v61 = vadd.f32 %v564_v2, %v2051_v60  ;;  %v512_v44 = vadd.f32 %v511_v39, %v2061_v63 }
 0x168   :  { %v665_v27 = vmul.f32 %v2091_v8, %v2091_v8  ;;  %v667_v39 = vmul.f32 %v2111_v48, %v2111_v48 }
 0x169   :  { %v771_v20 = vadd.f32 %v770_v32, %v661_v18  ;;  %v718_v57 = vadd.f32 %v717_v28, %v662_v42  ;;  %v566_v47 = vadd.f32 %v565_v61, %v2071_v52  ;;  %v513_v10 = vadd.f32 %v512_v44, %v2081_v40 }
 0x16a   :  { %v668_v18 = vmul.f32 %v2121_v25, %v2121_v25  ;;  %v669_v44 = vmul.f32 %v2131_v6, %v2131_v6 }
 0x16b   :  { %v772_v35 = vadd.f32 %v771_v20, %v663_v34  ;;  %v719_v49 = vadd.f32 %v718_v57, %v664_v33  ;;  %v567_v50 = vadd.f32 %v566_v47, %v2091_v8  ;;  %v514_v2 = vadd.f32 %v513_v10, %v2101_v51 }
 0x16c   :  { %v670_v34 = vmul.f32 %v2141_v14, %v2141_v14  ;;  %v671_v10 = vmul.f32 %v2151_v22, %v2151_v22 }
 0x16d   :  { %v773_v42 = vadd.f32 %v772_v35, %v665_v27  ;;  %v720_v32 = vadd.f32 %v719_v49, %v666_v31  ;;  %v568_v28 = vadd.f32 %v567_v50, %v2111_v48  ;;  %v515_v61 = vadd.f32 %v514_v2, %v2121_v25 }
 0x16e   :  { %v672_v27 = vmul.f32 %v2161_v1, %v2161_v1  ;;  %v673_v2 = vmul.f32 %v2171_v37, %v2171_v37 }
 0x16f   :  { %v774_v33 = vadd.f32 %v773_v42, %v667_v39  ;;  %v721_v20 = vadd.f32 %v720_v32, %v668_v18  ;;  %v569_v57 = vadd.f32 %v568_v28, %v2131_v6  ;;  %v516_v47 = vadd.f32 %v515_v61, %v2141_v14 }
 0x170   :  { %v674_v39 = vmul.f32 %v2181_v45, %v2181_v45  ;;  %v676_v18 = vmul.f32 %v2201_v12, %v2201_v12 }
 0x171   :  { %v775_v31 = vadd.f32 %v774_v33, %v669_v44  ;;  %v722_v35 = vadd.f32 %v721_v20, %v670_v34  ;;  %v570_v49 = vadd.f32 %v569_v57, %v2151_v22  ;;  %v517_v50 = vadd.f32 %v516_v47, %v2161_v1  ;;  %v3692_v47 = vld [vmem:[#allocation65_spill] sm:$0xff] }
 0x172   :  { %v675_v44 = vmul.f32 %v2191_v55, %v2191_v55  ;;  %v677_v22 = vmul.f32 %v3692_v47, %v3692_v47 }
 0x173   :  { %v776_v42 = vadd.f32 %v775_v31, %v671_v10  ;;  %v723_v32 = vadd.f32 %v722_v35, %v672_v27  ;;  %v571_v28 = vadd.f32 %v570_v49, %v2171_v37  ;;  %v518_v61 = vadd.f32 %v517_v50, %v2181_v45 }
 0x175   :  { %v777_v34 = vadd.f32 %v776_v42, %v673_v2  ;;  %v724_v33 = vadd.f32 %v723_v32, %v674_v39  ;;  %v572_v20 = vadd.f32 %v571_v28, %v2191_v55  ;;  %v519_v57 = vadd.f32 %v518_v61, %v2201_v12 }
 0x177   :  { %v778_v6 = vadd.f32 %v777_v34, %v675_v44  ;;  %v520_v48 = vrot.slane %v519_v57, 4  ;;  %v725_v10 = vadd.f32 %v724_v33, %v676_v18  ;;  %v573_v27 = vadd.f32 %v572_v20, %v3692_v47 }
 0x179   :  { %v521_v31 = vadd.f32 %v520_v48, %v519_v57  ;;  %v726_v35 = vrot.slane %v725_v10, 4  ;;  %v574_v49 = vrot.slane %v573_v27, 4  ;;  %v779_v50 = vadd.f32 %v778_v6, %v677_v22 }
 0x17b   :  { %v522_v37 = vrot.slane %v521_v31, 2  ;;  %v727_v8 = vadd.f32 %v726_v35, %v725_v10  ;;  %v575_v2 = vadd.f32 %v574_v49, %v573_v27  ;;  %v780_v39 = vrot.slane %v779_v50, 4 }
 0x17d   :  { %v728_v42 = vrot.slane %v727_v8, 2  ;;  %v576_v32 = vrot.slane %v575_v2, 2  ;;  %v781_v28 = vadd.f32 %v780_v39, %v779_v50  ;;  %v523_v61 = vadd.f32 %v522_v37, %v521_v31 }
 0x17f   :  { %v729_v55 = vadd.f32 %v728_v42, %v727_v8  ;;  %v577_v52 = vadd.f32 %v576_v32, %v575_v2  ;;  %v782_v60 = vrot.slane %v781_v28, 2  ;;  %v524_v33 = vrot.slane %v523_v61, 1  ;;  %v941_v42 = vld [vmem:[%s3545_s2] sm:$0x3] }
 0x181   :  { %v730_v44 = vrot.slane %v729_v55, 1  ;;  %v578_v34 = vrot.slane %v577_v52, 1  ;;  %v783_v18 = vadd.f32 %v782_v60, %v781_v28  ;;  %v525_v6 = vadd.f32 %v524_v33, %v523_v61 }
 0x182   :  { %v1463_v61 = vmov 1966171168  }
 0x183   :  { %v784_v20 = vrot.slane %v783_v18, 1  ;;  %v731_v48 = vadd.f32 %v730_v44, %v729_v55  ;;  %v579_v57 = vadd.f32 %v578_v34, %v577_v52  ;;  %v943_v52 = vlaneseq }
 0x184   :  { %v968_v44 = vunpack.c.l.s4 %v1463_v61  ;;  %v3698_v61 = vld [vmem:[#allocation13_spill] sm:$0xff] }
 0x185   :  { %v785_v47 = vadd.f32 %v784_v20, %v783_v18  ;;  %v787_v10 = vsel %vm786_vm0, %v525_v6, %v731_v48 }
 0x186   :  { %v969_v20 = vunpack.c.0.s8 %v968_v44 }
 0x187   :  { %v788_v22 = vsel %vm786_vm0, %v579_v57, %v785_v47  ;;  %v2401_v47 = vshrl.u32 %v943_v52, 7 }
 0x188   :  { %1414 = vmatprep.mubr.msk.f32.mxu1 %vm789_vm1, %v788_v22 }
 0x189   :  { %1415 = vmatmul.mubr.msk.f32.vlgmr.msra.gmra.mxu1 %vm789_vm1, %v787_v10  ;;  %v3617_v39 = vsub.s32 0, %v2401_v47  ;;  %v2410_v28 = vsub.s32 1, %v2401_v47  ;;  %v2415_v10 = vsub.s32 %v969_v20, %v2401_v47  ;;  %v3703_v20 = vld [vmem:[#allocation22_spill] sm:$0xff] }
 0x18b   :  { %v946_v32 = vrot.slane %v941_v42, %v3617_v39  ;;  %v950_v33 = vrot.slane %v941_v42, %v2410_v28  ;;  %v3697_v42 = vld [vmem:[#allocation10_spill] sm:$0xff] }
 0x249   :  { %v922_v27 = vpop.f32.mrf.mxu1 }
 0x24a   :  { %v927_v37 = vmul.f32 %v922_v27, %v922_v27 }
 0x24b   :  { %v2396_v8 = vpop.f32.mrf.mxu1 }
 0x24c   :  { %v931_v31 = vrot.slane %v927_v37, 7  ;;  %v928_v60 = vmul.f32 %v2396_v8, %v2396_v8 }
 0x24e   :  { %v935_v35 = vsub.f32 %v922_v27, %v931_v31  ;;  %v932_v49 = vrot.slane %v928_v60, 7  ;;  %v3693_v31 = vld [vmem:[#allocation2_spill] sm:$0xff] }
 0x250   :  { %v937_v55 = vadd.f32 1e-05, %v935_v35  ;;  %v936_v50 = vsub.f32 %v2396_v8, %v932_v49  ;;  %v3694_v35 = vld [vmem:[#allocation4_spill] sm:$0xff] }
 0x252   :  { %1458 = vrsqrt.f32 %v937_v55  ;;  %v938_v2 = vadd.f32 1e-05, %v936_v50  ;;  %v3695_v55 = vld [vmem:[#allocation6_spill] sm:$0xff]  ;;  %v3696_v50 = vld [vmem:[#allocation8_spill] sm:$0xff] }
 0x254   :  { %1460 = vrsqrt.f32 %v938_v2 }
 0x25f   :  { %v1459_v34 = vpop.eup %1458 }
 0x260   :  { %v953_v18 = vmul.f32 %v1459_v34, %v946_v32 }
 0x261   :  { %v1461_v48 = vpop.eup %1460 }
 0x262   :  { %v958_v57 = vrot.slane %v953_v18, 1  ;;  %v986_v6 = vrot.slane %v953_v18, %v2410_v28  ;;  %v954_v22 = vmul.f32 %v1461_v48, %v950_v33  ;;  %v3701_v18 = vld [vmem:[#allocation19_spill] sm:$0xff] }
 0x264   :  { %v2417_v37 = vmul.f32 %v958_v57, %v922_v27  ;;  %v2420_v60 = vmul.f32 %v986_v6, %v3693_v31  ;;  %v2423_v49 = vmul.f32 %v986_v6, %v3694_v35  ;;  %v2426_v52 = vmul.f32 %v986_v6, %v3695_v55  ;;  %v3699_v27 = vld [vmem:[#allocation16_spill] sm:$0xff]  ;;  %v3705_v57 = vld [vmem:[#allocation25_spill] sm:$0xff] }
 0x265   :  { %v2429_v2 = vmul.f32 %v986_v6, %v3696_v50  ;;  %v2432_v32 = vmul.f32 %v986_v6, %v3697_v42  ;;  %v2435_v44 = vmul.f32 %v986_v6, %v3698_v61  ;;  %v2438_v34 = vmul.f32 %v986_v6, %v3699_v27  ;;  %v3707_v35 = vld [vmem:[#allocation28_spill] sm:$0xff]  ;;  %v3709_v50 = vld [vmem:[#allocation31_spill] sm:$0xff] }
 0x266   :  { %v2441_v33 = vmul.f32 %v986_v6, %v3701_v18  ;;  %v2444_v48 = vmul.f32 %v986_v6, %v3703_v20  ;;  %v2447_v31 = vmul.f32 %v986_v6, %v3705_v57  ;;  %v2450_v55 = vmul.f32 %v986_v6, %v3707_v35  ;;  %v3711_v61 = vld [vmem:[#allocation35_spill] sm:$0xff]  ;;  %v3715_v20 = vld [vmem:[#allocation46_spill] sm:$0xff]  ;;  %v3716_v57 = vld [vmem:[#allocation49_spill] sm:$0xff] }
 0x267   :  { %3700 = vst [vmem:[#allocation32_spill] sm:$0xff] %v2438_v34  ;;  %v2453_v42 = vmul.f32 %v986_v6, %v3709_v50  ;;  %v2456_v39 = vmul.f32 %v986_v6, %v3711_v61  ;;  %v3713_v27 = vld [vmem:[#allocation39_spill] sm:$0xff]  ;;  %v3717_v35 = vld [vmem:[#allocation52_spill] sm:$0xff]  ;;  %v3719_v61 = vld [vmem:[#allocation58_spill] sm:$0xff] }
 0x268   :  { %3702 = vst [vmem:[#allocation34_spill] sm:$0xff] %v2441_v33  ;;  %3704 = vst [vmem:[#allocation36_spill] sm:$0xff] %v2444_v48  ;;  %v2459_v34 = vmul.f32 %v986_v6, %v3713_v27  ;;  %v3714_v18 = vld [vmem:[#allocation43_spill] sm:$0xff]  ;;  %v2465_v48 = vmul.f32 %v986_v6, %v3715_v20  ;;  %v2480_v27 = vmul.f32 %v986_v6, %v2159_v26 }
 0x269   :  { %3706 = vst [vmem:[#allocation38_spill] sm:$0xff] %v2447_v31  ;;  %3708 = vst [vmem:[#allocation40_spill] sm:$0xff] %v2450_v55  ;;  %v2462_v33 = vmul.f32 %v986_v6, %v3714_v18  ;;  %v2468_v31 = vmul.f32 %v986_v6, %v3716_v57  ;;  %v2471_v55 = vmul.f32 %v986_v6, %v3717_v35  ;;  %v3718_v50 = vld [vmem:[#allocation55_spill] sm:$0xff] }
 0x26a   :  { %3710 = vst [vmem:[#allocation42_spill] sm:$0xff] %v2453_v42  ;;  %3712 = vst [vmem:[#allocation2_spill] sm:$0xff] %v2456_v39  ;;  %v2474_v42 = vmul.f32 %v986_v6, %v3718_v50  ;;  %v2477_v39 = vmul.f32 %v986_v6, %v3719_v61  ;;  %v2483_v18 = vmul.f32 %v986_v6, %v2179_v41 }
 0x26b   :  { %v2486_v20 = vmul.f32 %v986_v6, %v2199_v4  ;;  %v2489_v57 = vmul.f32 %v986_v6, %v2219_v24  ;;  %v2492_v35 = vmul.f32 %v986_v6, %v2235_v36  ;;  %v2495_v50 = vmul.f32 %v986_v6, %v2247_v9 }
 0x26c   :  { %v2498_v61 = vmul.f32 %v986_v6, %v1794_v54  ;;  %v2501_v26 = vmul.f32 %v986_v6, %v1814_v62  ;;  %v2504_v41 = vmul.f32 %v986_v6, %v1834_v7  ;;  %v2507_v4 = vmul.f32 %v986_v6, %v1854_v15 }
 0x26d   :  { %v2510_v24 = vmul.f32 %v986_v6, %v1874_v23  ;;  %v2513_v36 = vmul.f32 %v986_v6, %v1894_v30  ;;  %v2516_v9 = vmul.f32 %v986_v6, %v1914_v38  ;;  %v2519_v54 = vmul.f32 %v986_v6, %v1934_v46 }
 0x26e   :  { %3720 = vst [vmem:[#allocation4_spill] sm:$0xff] %v2498_v61  ;;  %3721 = vst [vmem:[#allocation6_spill] sm:$0xff] %v2501_v26  ;;  %v2522_v62 = vmul.f32 %v986_v6, %v1954_v56  ;;  %v2525_v7 = vmul.f32 %v986_v6, %v1980_v13  ;;  %v2528_v15 = vmul.f32 %v986_v6, %v1988_v21  ;;  %v959_v56 = vrot.slane %v954_v22, 1  ;;  %v3771_v61 = vld [vmem:[#allocation12_spill] sm:$0xff] }
 0x26f   :  { %3722 = vst [vmem:[#allocation8_spill] sm:$0xff] %v2504_v41  ;;  %3723 = vst [vmem:[#allocation10_spill] sm:$0xff] %v2507_v4  ;;  %v2531_v23 = vmul.f32 %v986_v6, %v3686_v43  ;;  %v2534_v30 = vmul.f32 %v986_v6, %v3688_v59  ;;  %v2537_v38 = vmul.f32 %v986_v6, %v3690_v53  ;;  %v3767_v41 = vld [vmem:[#allocation68_spill] sm:$0xff] }
 0x270   :  { %3724 = vst [vmem:[#allocation13_spill] sm:$0xff] %v2510_v24  ;;  %3725 = vst [vmem:[#allocation16_spill] sm:$0xff] %v2513_v36  ;;  %v2540_v46 = vmul.f32 %v986_v6, %v2041_v29  ;;  %v2546_v13 = vmul.f32 %v986_v6, %v2061_v63  ;;  %v2549_v21 = vmul.f32 %v986_v6, %v2081_v40  ;;  %v3764_v24 = vld [vmem:[#allocation63_spill] sm:$0xff] }
 0x271   :  { %3726 = vst [vmem:[#allocation19_spill] sm:$0xff] %v2516_v9  ;;  %3727 = vst [vmem:[#allocation22_spill] sm:$0xff] %v2519_v54  ;;  %v2552_v43 = vmul.f32 %v986_v6, %v2101_v51  ;;  %v2555_v59 = vmul.f32 %v986_v6, %v2121_v25  ;;  %v2558_v53 = vmul.f32 %v986_v6, %v2141_v14 }
 0x272   :  { %3728 = vst [vmem:[#allocation25_spill] sm:$0xff] %v2522_v62  ;;  %3729 = vst [vmem:[#allocation28_spill] sm:$0xff] %v2525_v7  ;;  %v2543_v62 = vrot.slane %v954_v22, %v2410_v28  ;;  %v2561_v29 = vmul.f32 %v986_v6, %v2161_v1  ;;  %v2564_v22 = vmul.f32 %v986_v6, %v2181_v45 }
 0x273   :  { %3730 = vst [vmem:[#allocation31_spill] sm:$0xff] %v2528_v15  ;;  %3731 = vst [vmem:[#allocation35_spill] sm:$0xff] %v2531_v23  ;;  %v963_v63 = vmul.f32 %v959_v56, %v2396_v8  ;;  %v2568_v40 = vmul.f32 %v986_v6, %v2201_v12  ;;  %v3748_v56 = vld [vmem:[#allocation14_spill] sm:$0xff]  ;;  %v3749_v6 = vld [vmem:[#allocation17_spill] sm:$0xff] }
 0x274   :  { %3732 = vst [vmem:[#allocation39_spill] sm:$0xff] %v2534_v30  ;;  %3733 = vst [vmem:[#allocation43_spill] sm:$0xff] %v2537_v38  ;;  %v1002_v12 = vmul.f32 %v2543_v62, %v3748_v56  ;;  %v3759_v23 = vld [vmem:[#allocation50_spill] sm:$0xff]  ;;  %v2648_v4 = vmul.f32 %v2543_v62, %v3764_v24  ;;  %v2668_v24 = vmul.f32 %v2543_v62, %v1804_v58 }
 0x275   :  { %3734 = vst [vmem:[#allocation46_spill] sm:$0xff] %v2540_v46  ;;  %3735 = vst [vmem:[#allocation49_spill] sm:$0xff] %v2546_v13  ;;  %v966_v1 = vcombine.low %v2417_v37, %v963_v63  ;;  %v3752_v37 = vld [vmem:[#allocation26_spill] sm:$0xff]  ;;  %v3753_v63 = vld [vmem:[#allocation29_spill] sm:$0xff] }
 0x276   :  { %3736 = vst [vmem:[#allocation52_spill] sm:$0xff] %v2549_v21  ;;  %3737 = vst [vmem:[#allocation55_spill] sm:$0xff] %v2552_v43  ;;  %v3743_v21 = vld [vmem:[#allocation3_spill] sm:$0xff]  ;;  %v3744_v43 = vld [vmem:[#allocation5_spill] sm:$0xff]  ;;  %v2600_v56 = vmul.f32 %v2543_v62, %v3753_v63 }
 0x277   :  { %3738 = vst [vmem:[#allocation58_spill] sm:$0xff] %v2555_v59  ;;  %3739 = vst [vmem:[#allocation69_spill] sm:$0xff] %v2558_v53  ;;  %v992_v51 = vmul.f32 %v2543_v62, %v3743_v21  ;;  %v994_v25 = vmul.f32 %v2543_v62, %v3744_v43  ;;  %v3745_v59 = vld [vmem:[#allocation7_spill] sm:$0xff]  ;;  %v1004_v21 = vmul.f32 %v2543_v62, %v3749_v6  ;;  %v3754_v13 = vld [vmem:[#allocation33_spill] sm:$0xff] }
 0x278   :  { %3740 = vst [vmem:[#allocation70_spill] sm:$0xff] %v2561_v29  ;;  %3741 = vst [vmem:[#allocation71_spill] sm:$0xff] %v2564_v22  ;;  %v996_v14 = vmul.f32 %v2543_v62, %v3745_v59  ;;  %v3746_v29 = vld [vmem:[#allocation9_spill] sm:$0xff]  ;;  %v3747_v22 = vld [vmem:[#allocation11_spill] sm:$0xff]  ;;  %v2604_v6 = vmul.f32 %v2543_v62, %v3754_v13  ;;  %v2624_v13 = vmul.f32 %v2543_v62, %v3759_v23 }
 0x279   :  { %3742 = vst [vmem:[#allocation72_spill] sm:$0xff] %v2568_v40  ;;  %v998_v45 = vmul.f32 %v2543_v62, %v3746_v29  ;;  %v1000_v8 = vmul.f32 %v2543_v62, %v3747_v22  ;;  %v3750_v40 = vld [vmem:[#allocation20_spill] sm:$0xff]  ;;  %v3751_v53 = vld [vmem:[#allocation23_spill] sm:$0xff]  ;;  %v2595_v29 = vmul.f32 %v2543_v62, %v3752_v37  ;;  %v973_v22 = vrot.slane %v966_v1, %v2415_v10  ;;  %v3763_v23 = vld [vmem:[#allocation61_spill] sm:$0xff] }
 0x27a   :  { %v2587_v43 = vmul.f32 %v2543_v62, %v3750_v40  ;;  %v2591_v59 = vmul.f32 %v2543_v62, %v3751_v53  ;;  %v3755_v40 = vld [vmem:[#allocation37_spill] sm:$0xff]  ;;  %v3757_v37 = vld [vmem:[#allocation44_spill] sm:$0xff]  ;;  %v3758_v1 = vld [vmem:[#allocation47_spill] sm:$0xff]  ;;  %v2644_v36 = vmul.f32 %v2543_v62, %v3763_v23  ;;  %v2664_v23 = vmul.f32 %v2543_v62, %v3767_v41  ;;  %3769 = vst [vmem:[#allocation5_spill] sm:$0xff] %v2668_v24 }
 0x27b   :  { %v2608_v46 = vmul.f32 %v2543_v62, %v3755_v40  ;;  %v3756_v53 = vld [vmem:[#allocation41_spill] sm:$0xff]  ;;  %v2616_v30 = vmul.f32 %v2543_v62, %v3757_v37  ;;  %v2620_v63 = vmul.f32 %v2543_v62, %v3758_v1  ;;  %v955_v40 = vld [vmem:[%s3546_s3] sm:$0x3]  ;;  %v980_v15 = vrot.slane %v973_v22, %v2415_v10  ;;  %v3761_v37 = vld [vmem:[#allocation56_spill] sm:$0xff] }
 0x27c   :  { %v2612_v38 = vmul.f32 %v2543_v62, %v3756_v53  ;;  %v3760_v53 = vld [vmem:[#allocation53_spill] sm:$0xff]  ;;  %v2636_v54 = vmul.f32 %v2543_v62, %v3761_v37  ;;  %v3762_v1 = vld [vmem:[#allocation59_spill] sm:$0xff]  ;;  %v2652_v10 = vmul.f32 %v2543_v62, %v2209_v16  ;;  %v3765_v22 = vld [vmem:[#allocation66_spill] sm:$0xff]  ;;  %3768 = vst [vmem:[#allocation3_spill] sm:$0xff] %v2664_v23  ;;  %v2672_v16 = vmul.f32 %v2543_v62, %v1824_v3 }
 0x27d   :  { %v2632_v7 = vmul.f32 %v2543_v62, %v3760_v53  ;;  %v2640_v9 = vmul.f32 %v2543_v62, %v3762_v1  ;;  %v2656_v53 = vmul.f32 %v2543_v62, %v3765_v22  ;;  %v3766_v37 = vld [vmem:[#allocation67_spill] sm:$0xff]  ;;  %v982_v26 = vsub.f32 %v955_v40, %v980_v15  ;;  %v3774_v24 = vld [vmem:[#allocation18_spill] sm:$0xff]  ;;  %v3775_v15 = vld [vmem:[#allocation21_spill] sm:$0xff] }
 0x27e   :  { %v2660_v1 = vmul.f32 %v2543_v62, %v3766_v37  ;;  %v2676_v22 = vmul.f32 %v2543_v62, %v1844_v11  ;;  %v2680_v37 = vmul.f32 %v2543_v62, %v1864_v19  ;;  %v2684_v41 = vmul.f32 %v2543_v62, %v3771_v61  ;;  %v3773_v23 = vld [vmem:[#allocation15_spill] sm:$0xff]  ;;  %v3776_v40 = vld [vmem:[#allocation24_spill] sm:$0xff] }
 0x27f   :  { %v2688_v58 = vmul.f32 %v2543_v62, %v3773_v23  ;;  %v2692_v3 = vmul.f32 %v2543_v62, %v3774_v24  ;;  %v2696_v11 = vmul.f32 %v2543_v62, %v3775_v15  ;;  %v2700_v19 = vmul.f32 %v2543_v62, %v3776_v40 }
 0x280   :  { %3770 = vst [vmem:[#allocation7_spill] sm:$0xff] %v2680_v37  ;;  %3772 = vst [vmem:[#allocation9_spill] sm:$0xff] %v2684_v41  ;;  %v3778_v37 = vld [vmem:[#allocation27_spill] sm:$0xff]  ;;  %v3780_v41 = vld [vmem:[#allocation30_spill] sm:$0xff]  ;;  %v2712_v24 = vmul.f32 %v2543_v62, %v3687_v5  ;;  %v2716_v15 = vmul.f32 %v2543_v62, %v3689_v17  ;;  %v2720_v40 = vmul.f32 %v2543_v62, %v3691_v0 }
 0x281   :  { %3777 = vst [vmem:[#allocation11_spill] sm:$0xff] %v2700_v19  ;;  %v2704_v61 = vmul.f32 %v2543_v62, %v3778_v37  ;;  %v2708_v23 = vmul.f32 %v2543_v62, %v3780_v41  ;;  %v3785_v19 = vld [vmem:[#allocation45_spill] sm:$0xff] }
 0x282   :  { %3782 = vst [vmem:[#allocation20_spill] sm:$0xff] %v2712_v24  ;;  %3783 = vst [vmem:[#allocation23_spill] sm:$0xff] %v2716_v15  ;;  %v2724_v37 = vmul.f32 %v2543_v62, %v3785_v19  ;;  %v3791_v24 = vld [vmem:[#allocation54_spill] sm:$0xff]  ;;  %v3793_v15 = vld [vmem:[#allocation57_spill] sm:$0xff] }
 0x283   :  { %3779 = vst [vmem:[#allocation14_spill] sm:$0xff] %v2704_v61  ;;  %3781 = vst [vmem:[#allocation17_spill] sm:$0xff] %v2708_v23  ;;  %v3787_v61 = vld [vmem:[#allocation48_spill] sm:$0xff]  ;;  %v3789_v23 = vld [vmem:[#allocation51_spill] sm:$0xff]  ;;  %v2736_v17 = vmul.f32 %v2543_v62, %v3791_v24  ;;  %v2740_v0 = vmul.f32 %v2543_v62, %v3793_v15 }
 0x284   :  { %3784 = vst [vmem:[#allocation26_spill] sm:$0xff] %v2720_v40  ;;  %3786 = vst [vmem:[#allocation29_spill] sm:$0xff] %v2724_v37  ;;  %v2728_v41 = vmul.f32 %v2543_v62, %v3787_v61  ;;  %v2732_v5 = vmul.f32 %v2543_v62, %v3789_v23  ;;  %v3794_v40 = vsub.s32 0, %v2401_v47  ;;  %v2747_v37 = vrot.slane %v982_v26, %v2410_v28  ;;  %v3795_v61 = vld [vmem:[#allocation60_spill] sm:$0xff]  ;;  %v3796_v23 = vld [vmem:[#allocation62_spill] sm:$0xff] }
 0x285   :  { %3792 = vst [vmem:[#allocation41_spill] sm:$0xff] %v2736_v17  ;;  %v3797_v24 = vld [vmem:[#allocation64_spill] sm:$0xff]  ;;  %v3798_v15 = vld [vmem:[#allocation65_spill] sm:$0xff] }
 0x286   :  { %3788 = vst [vmem:[#allocation33_spill] sm:$0xff] %v2728_v41  ;;  %3790 = vst [vmem:[#allocation37_spill] sm:$0xff] %v2732_v5  ;;  %v2744_v19 = vrot.slane %v982_v26, %v3794_v40  ;;  %v2751_v41 = vmul.f32 %v2543_v62, %v3795_v61  ;;  %v2755_v5 = vmul.f32 %v2543_v62, %v3796_v23 }
 0x287   :  { %v2759_v17 = vmul.f32 %v2543_v62, %v3797_v24  ;;  %v2763_v47 = vmul.f32 %v2543_v62, %v3798_v15  ;;  %v2770_v26 = vadd.f32 %v2747_v37, %v992_v51  ;;  %v2777_v61 = vadd.f32 %v2747_v37, %v994_v25  ;;  %v3800_v24 = vld [vmem:[#allocation32_spill] sm:$0xff]  ;;  %v3801_v15 = vld [vmem:[#allocation34_spill] sm:$0xff] }
 0x288   :  { %v2767_v28 = vadd.f32 %v2744_v19, %v2420_v60  ;;  %v2774_v40 = vadd.f32 %v2744_v19, %v2423_v49  ;;  %v2781_v23 = vadd.f32 %v2744_v19, %v2426_v52  ;;  %v2784_v62 = vadd.f32 %v2747_v37, %v996_v14 }
 0x289   :  { %v2788_v60 = vadd.f32 %v2744_v19, %v2429_v2  ;;  %v2791_v51 = vadd.f32 %v2747_v37, %v998_v45  ;;  %v2795_v49 = vadd.f32 %v2744_v19, %v2432_v32  ;;  %v2798_v25 = vadd.f32 %v2747_v37, %v1000_v8 }
 0x28a   :  { %v2802_v52 = vadd.f32 %v2744_v19, %v2435_v44  ;;  %v2805_v14 = vadd.f32 %v2747_v37, %v1002_v12  ;;  %v2809_v2 = vadd.f32 %v2744_v19, %v3800_v24  ;;  %v2812_v45 = vadd.f32 %v2747_v37, %v1004_v21  ;;  %v3803_v44 = vld [vmem:[#allocation36_spill] sm:$0xff]  ;;  %v3805_v24 = vld [vmem:[#allocation38_spill] sm:$0xff] }
 0x28b   :  { %v2816_v32 = vadd.f32 %v2744_v19, %v3801_v15  ;;  %v2820_v8 = vadd.f32 %v2747_v37, %v2587_v43  ;;  %v2828_v12 = vadd.f32 %v2747_v37, %v2591_v59  ;;  %v2832_v21 = vadd.f32 %v2744_v19, %v3805_v24 }
 0x28c   :  { %3799 = vst [vmem:[#allocation44_spill] sm:$0xff] %v2802_v52  ;;  %v2824_v52 = vadd.f32 %v2744_v19, %v3803_v44  ;;  %v2836_v15 = vadd.f32 %v2747_v37, %v2595_v29  ;;  %v2844_v44 = vadd.f32 %v2747_v37, %v2600_v56  ;;  %v2852_v24 = vadd.f32 %v2747_v37, %v2604_v6 }
 0x28d   :  { %3802 = vst [vmem:[#allocation47_spill] sm:$0xff] %v2816_v32  ;;  %3806 = vst [vmem:[#allocation53_spill] sm:$0xff] %v2832_v21  ;;  %v3807_v32 = vld [vmem:[#allocation40_spill] sm:$0xff]  ;;  %v3809_v21 = vld [vmem:[#allocation2_spill] sm:$0xff]  ;;  %v2864_v56 = vadd.f32 %v2744_v19, %v2459_v34  ;;  %v2872_v6 = vadd.f32 %v2744_v19, %v2462_v33  ;;  %v2884_v34 = vadd.f32 %v2747_v37, %v2620_v63 }
 0x28e   :  { %3804 = vst [vmem:[#allocation50_spill] sm:$0xff] %v2824_v52  ;;  %v2840_v43 = vadd.f32 %v2744_v19, %v3807_v32  ;;  %v3808_v52 = vld [vmem:[#allocation42_spill] sm:$0xff]  ;;  %v2856_v29 = vadd.f32 %v2744_v19, %v3809_v21  ;;  %v2860_v32 = vadd.f32 %v2747_v37, %v2608_v46  ;;  %v2876_v21 = vadd.f32 %v2747_v37, %v2616_v30 }
 0x28f   :  { %v2848_v59 = vadd.f32 %v2744_v19, %v3808_v52  ;;  %v2868_v52 = vadd.f32 %v2747_v37, %v2612_v38  ;;  %v2880_v46 = vadd.f32 %v2744_v19, %v2465_v48  ;;  %v2888_v38 = vadd.f32 %v2744_v19, %v2468_v31 }
 0x290   :  { %v2892_v33 = vadd.f32 %v2747_v37, %v2624_v13  ;;  %v2896_v30 = vadd.f32 %v2744_v19, %v2471_v55  ;;  %v2900_v48 = vadd.f32 %v2747_v37, %v2632_v7  ;;  %v2904_v63 = vadd.f32 %v2744_v19, %v2474_v42 }
 0x291   :  { %v2908_v31 = vadd.f32 %v2747_v37, %v2636_v54  ;;  %v2912_v13 = vadd.f32 %v2744_v19, %v2477_v39  ;;  %v2916_v55 = vadd.f32 %v2747_v37, %v2640_v9  ;;  %v2920_v7 = vadd.f32 %v2744_v19, %v2480_v27 }
 0x292   :  { %v2924_v42 = vadd.f32 %v2747_v37, %v2644_v36  ;;  %v2928_v54 = vadd.f32 %v2744_v19, %v2483_v18  ;;  %v2932_v39 = vadd.f32 %v2747_v37, %v2648_v4  ;;  %v2936_v9 = vadd.f32 %v2744_v19, %v2486_v20 }
 0x293   :  { %v2940_v27 = vadd.f32 %v2747_v37, %v2652_v10  ;;  %v2944_v36 = vadd.f32 %v2744_v19, %v2489_v57  ;;  %v2948_v18 = vadd.f32 %v2747_v37, %v2656_v53  ;;  %v2952_v4 = vadd.f32 %v2744_v19, %v2492_v35 }
 0x294   :  { %v2956_v20 = vadd.f32 %v2747_v37, %v2660_v1  ;;  %v2960_v10 = vadd.f32 %v2744_v19, %v2495_v50  ;;  %v2980_v50 = vadd.f32 %v2747_v37, %v2672_v16 }
 0x295   :  { %3810 = vst [vmem:[#allocation56_spill] sm:$0xff] %v2940_v27  ;;  %3811 = vst [vmem:[#allocation59_spill] sm:$0xff] %v2944_v36  ;;  %v3815_v27 = vld [vmem:[#allocation3_spill] sm:$0xff]  ;;  %v3816_v36 = vld [vmem:[#allocation4_spill] sm:$0xff] }
 0x296   :  { %3812 = vst [vmem:[#allocation61_spill] sm:$0xff] %v2948_v18  ;;  %3813 = vst [vmem:[#allocation63_spill] sm:$0xff] %v2952_v4  ;;  %v2964_v57 = vadd.f32 %v2747_v37, %v3815_v27  ;;  %v2968_v53 = vadd.f32 %v2744_v19, %v3816_v36  ;;  %v3818_v18 = vld [vmem:[#allocation5_spill] sm:$0xff]  ;;  %v3820_v4 = vld [vmem:[#allocation6_spill] sm:$0xff]  ;;  %v2988_v36 = vadd.f32 %v2747_v37, %v2676_v22 }
 0x297   :  { %3814 = vst [vmem:[#allocation66_spill] sm:$0xff] %v2960_v10  ;;  %v2972_v35 = vadd.f32 %v2747_v37, %v3818_v18  ;;  %v2976_v1 = vadd.f32 %v2744_v19, %v3820_v4  ;;  %3822 = vst [vmem:[#allocation15_spill] sm:$0xff] %v2980_v50  ;;  %v3823_v10 = vld [vmem:[#allocation8_spill] sm:$0xff]  ;;  %v3830_v50 = vld [vmem:[#allocation9_spill] sm:$0xff] }
 0x298   :  { %3817 = vst [vmem:[#allocation67_spill] sm:$0xff] %v2968_v53  ;;  %v2984_v27 = vadd.f32 %v2744_v19, %v3823_v10  ;;  %v3825_v53 = vld [vmem:[#allocation10_spill] sm:$0xff]  ;;  %v3004_v10 = vadd.f32 %v2747_v37, %v3830_v50 }
 0x299   :  { %3819 = vst [vmem:[#allocation68_spill] sm:$0xff] %v2972_v35  ;;  %3821 = vst [vmem:[#allocation12_spill] sm:$0xff] %v2976_v1  ;;  %v2992_v18 = vadd.f32 %v2744_v19, %v3825_v53  ;;  %v3827_v35 = vld [vmem:[#allocation7_spill] sm:$0xff]  ;;  %v3828_v1 = vld [vmem:[#allocation13_spill] sm:$0xff]  ;;  %v3012_v53 = vadd.f32 %v2747_v37, %v2688_v58 }
 0x29a   :  { %3824 = vst [vmem:[#allocation18_spill] sm:$0xff] %v2984_v27  ;;  %v2996_v4 = vadd.f32 %v2747_v37, %v3827_v35  ;;  %v3000_v16 = vadd.f32 %v2744_v19, %v3828_v1  ;;  %v3831_v27 = vld [vmem:[#allocation16_spill] sm:$0xff]  ;;  %v3020_v1 = vadd.f32 %v2747_v37, %v2692_v3 }
 0x29b   :  { %3826 = vst [vmem:[#allocation21_spill] sm:$0xff] %v2992_v18  ;;  %v3008_v22 = vadd.f32 %v2744_v19, %v3831_v27  ;;  %3833 = vst [vmem:[#allocation30_spill] sm:$0xff] %v3012_v53  ;;  %v3834_v18 = vld [vmem:[#allocation19_spill] sm:$0xff]  ;;  %v3028_v27 = vadd.f32 %v2747_v37, %v2696_v11 }
 0x29c   :  { %3829 = vst [vmem:[#allocation24_spill] sm:$0xff] %v3000_v16  ;;  %v3016_v35 = vadd.f32 %v2744_v19, %v3834_v18  ;;  %3836 = vst [vmem:[#allocation48_spill] sm:$0xff] %v3020_v1  ;;  %v3837_v16 = vld [vmem:[#allocation22_spill] sm:$0xff]  ;;  %v3842_v53 = vld [vmem:[#allocation11_spill] sm:$0xff] }
 0x29d   :  { %3832 = vst [vmem:[#allocation27_spill] sm:$0xff] %v3008_v22  ;;  %v3024_v50 = vadd.f32 %v2744_v19, %v3837_v16  ;;  %3839 = vst [vmem:[#allocation54_spill] sm:$0xff] %v3028_v27  ;;  %v3840_v22 = vld [vmem:[#allocation25_spill] sm:$0xff]  ;;  %v3036_v18 = vadd.f32 %v2747_v37, %v3842_v53  ;;  %v3846_v1 = vld [vmem:[#allocation14_spill] sm:$0xff] }
 0x29e   :  { %3835 = vst [vmem:[#allocation45_spill] sm:$0xff] %v3016_v35  ;;  %v3032_v58 = vadd.f32 %v2744_v19, %v3840_v22  ;;  %v3844_v35 = vld [vmem:[#allocation28_spill] sm:$0xff]  ;;  %v3044_v16 = vadd.f32 %v2747_v37, %v3846_v1  ;;  %v3850_v27 = vld [vmem:[#allocation17_spill] sm:$0xff] }
 0x29f   :  { %3838 = vst [vmem:[#allocation51_spill] sm:$0xff] %v3024_v50  ;;  %3843 = vst [vmem:[#allocation60_spill] sm:$0xff] %v3036_v18  ;;  %v3040_v3 = vadd.f32 %v2744_v19, %v3844_v35  ;;  %v3848_v50 = vld [vmem:[#allocation31_spill] sm:$0xff]  ;;  %v3052_v22 = vadd.f32 %v2747_v37, %v3850_v27  ;;  %v3854_v18 = vld [vmem:[#allocation20_spill] sm:$0xff] }
 0x2a0   :  { %3841 = vst [vmem:[#allocation57_spill] sm:$0xff] %v3032_v58  ;;  %3847 = vst [vmem:[#allocation64_spill] sm:$0xff] %v3044_v16  ;;  %v3048_v11 = vadd.f32 %v2744_v19, %v3848_v50  ;;  %v3852_v58 = vld [vmem:[#allocation35_spill] sm:$0xff]  ;;  %v3060_v35 = vadd.f32 %v2747_v37, %v3854_v18 }
 0x2a1   :  { %3845 = vst [vmem:[#allocation62_spill] sm:$0xff] %v3040_v3  ;;  %3851 = vst [vmem:[#allocation32_spill] sm:$0xff] %v3052_v22  ;;  %v3056_v53 = vadd.f32 %v2744_v19, %v3852_v58  ;;  %v3856_v3 = vld [vmem:[#allocation39_spill] sm:$0xff]  ;;  %v3862_v22 = vld [vmem:[#allocation26_spill] sm:$0xff] }
 0x2a2   :  { %3849 = vst [vmem:[#allocation65_spill] sm:$0xff] %v3048_v11  ;;  %3855 = vst [vmem:[#allocation36_spill] sm:$0xff] %v3060_v35  ;;  %v3064_v1 = vadd.f32 %v2744_v19, %v3856_v3  ;;  %v3858_v16 = vld [vmem:[#allocation23_spill] sm:$0xff]  ;;  %v3076_v58 = vadd.f32 %v2747_v37, %v3862_v22  ;;  %v3866_v35 = vld [vmem:[#allocation29_spill] sm:$0xff] }
 0x2a3   :  { %3853 = vst [vmem:[#allocation34_spill] sm:$0xff] %v3056_v53  ;;  %v3068_v50 = vadd.f32 %v2747_v37, %v3858_v16  ;;  %v3860_v11 = vld [vmem:[#allocation43_spill] sm:$0xff]  ;;  %v3864_v53 = vld [vmem:[#allocation46_spill] sm:$0xff]  ;;  %v3084_v3 = vadd.f32 %v2747_v37, %v3866_v35 }
 0x2a4   :  { %3857 = vst [vmem:[#allocation38_spill] sm:$0xff] %v3064_v1  ;;  %v3072_v27 = vadd.f32 %v2744_v19, %v3860_v11  ;;  %3863 = vst [vmem:[#allocation2_spill] sm:$0xff] %v3076_v58  ;;  %v3080_v18 = vadd.f32 %v2744_v19, %v3864_v53  ;;  %v3868_v1 = vld [vmem:[#allocation49_spill] sm:$0xff] }
 0x2a5   :  { %3859 = vst [vmem:[#allocation40_spill] sm:$0xff] %v3068_v50  ;;  %3867 = vst [vmem:[#allocation4_spill] sm:$0xff] %v3084_v3  ;;  %v3088_v16 = vadd.f32 %v2744_v19, %v3868_v1  ;;  %v3870_v50 = vld [vmem:[#allocation33_spill] sm:$0xff] }
 0x2a6   :  { %3861 = vst [vmem:[#allocation42_spill] sm:$0xff] %v3072_v27  ;;  %3865 = vst [vmem:[#allocation3_spill] sm:$0xff] %v3080_v18  ;;  %v3092_v11 = vadd.f32 %v2747_v37, %v3870_v50  ;;  %v3871_v27 = vld [vmem:[#allocation52_spill] sm:$0xff]  ;;  %v3873_v58 = vld [vmem:[#allocation37_spill] sm:$0xff] }
 0x2a7   :  { %3869 = vst [vmem:[#allocation5_spill] sm:$0xff] %v3088_v16  ;;  %v3096_v22 = vadd.f32 %v2744_v19, %v3871_v27  ;;  %v3100_v53 = vadd.f32 %v2747_v37, %v3873_v58  ;;  %v3874_v18 = vld [vmem:[#allocation55_spill] sm:$0xff]  ;;  %v3876_v3 = vld [vmem:[#allocation41_spill] sm:$0xff]  ;;  %v3877_v16 = vld [vmem:[#allocation58_spill] sm:$0xff]  ;;  %v3116_v27 = vadd.f32 %v2747_v37, %v2740_v0 }
 0x2a8   :  { %v3104_v35 = vadd.f32 %v2744_v19, %v3874_v18  ;;  %v3108_v1 = vadd.f32 %v2747_v37, %v3876_v3  ;;  %v3112_v50 = vadd.f32 %v2744_v19, %v3877_v16  ;;  %v3124_v18 = vadd.f32 %v2747_v37, %v2751_v41 }
 0x2a9   :  { %3872 = vst [vmem:[#allocation6_spill] sm:$0xff] %v3096_v22  ;;  %v3879_v22 = vld [vmem:[#allocation69_spill] sm:$0xff]  ;;  %v3132_v16 = vadd.f32 %v2747_v37, %v2755_v5  ;;  %v1199_v5 = vmax.f32 %v2770_v26, 0.0  ;;  %v1209_v26 = vmax.f32 %v2805_v14, 0.0 }
 0x2aa   :  { %3875 = vst [vmem:[#allocation8_spill] sm:$0xff] %v3104_v35  ;;  %3878 = vst [vmem:[#allocation10_spill] sm:$0xff] %v3112_v50  ;;  %v3120_v58 = vadd.f32 %v2744_v19, %v3879_v22  ;;  %v3881_v35 = vld [vmem:[#allocation70_spill] sm:$0xff]  ;;  %v3884_v50 = vld [vmem:[#allocation71_spill] sm:$0xff]  ;;  %v3140_v22 = vadd.f32 %v2747_v37, %v2759_v17  ;;  %v1203_v17 = vmax.f32 %v2784_v62, 0.0 }
 0x2ab   :  { %v3128_v3 = vadd.f32 %v2744_v19, %v3881_v35  ;;  %3883 = vst [vmem:[#allocation9_spill] sm:$0xff] %v3132_v16  ;;  %v3136_v0 = vadd.f32 %v2744_v19, %v3884_v50  ;;  %v3148_v35 = vadd.f32 %v2747_v37, %v2763_v47  ;;  %v1200_v16 = vmax.f32 %v2774_v40, 0.0  ;;  %1297 = vst [vmem:[%s3547_s5 + $0x8] sm:$0xff] %v1199_v5  ;;  %v3888_v47 = vld [vmem:[#allocation44_spill] sm:$0xff]  ;;  %v3891_v14 = vld [vmem:[#allocation53_spill] sm:$0xff] }
 0x2ac   :  { %3880 = vst [vmem:[#allocation7_spill] sm:$0xff] %v3120_v58  ;;  %3886 = vst [vmem:[#allocation19_spill] sm:$0xff] %v3140_v22  ;;  %v3887_v58 = vld [vmem:[#allocation72_spill] sm:$0xff]  ;;  %v1201_v50 = vmax.f32 %v2777_v61, 0.0  ;;  %v1204_v22 = vmax.f32 %v2788_v60, 0.0  ;;  %v1207_v37 = vmax.f32 %v2798_v25, 0.0 }
 0x2ad   :  { %3882 = vst [vmem:[#allocation13_spill] sm:$0xff] %v3128_v3  ;;  %3885 = vst [vmem:[#allocation16_spill] sm:$0xff] %v3136_v0  ;;  %v3144_v41 = vadd.f32 %v2744_v19, %v3887_v58  ;;  %v1198_v3 = vmax.f32 %v2767_v28, 0.0  ;;  %v1202_v0 = vmax.f32 %v2781_v23, 0.0  ;;  %v1205_v19 = vmax.f32 %v2791_v51, 0.0  ;;  %v3889_v23 = vld [vmem:[#allocation47_spill] sm:$0xff] }
 0x2ae   :  { %v1206_v58 = vmax.f32 %v2795_v49, 0.0  ;;  %v1208_v28 = vmax.f32 %v3888_v47, 0.0  ;;  %v1210_v40 = vmax.f32 %v2809_v2, 0.0  ;;  %v1211_v61 = vmax.f32 %v2812_v45, 0.0  ;;  %1298 = vst [vmem:[%s3547_s5 + $0x10] sm:$0xff] %v1200_v16  ;;  %1299 = vst [vmem:[%s3547_s5 + $0x18] sm:$0xff] %v1201_v50 }
 0x2af   :  { %1296 = vst [vmem:[%s3547_s5] sm:$0xff] %v1198_v3  ;;  %1300 = vst [vmem:[%s3547_s5 + $0x20] sm:$0xff] %v1202_v0  ;;  %v1212_v62 = vmax.f32 %v3889_v23, 0.0  ;;  %v1213_v60 = vmax.f32 %v2820_v8, 0.0  ;;  %v3890_v51 = vld [vmem:[#allocation50_spill] sm:$0xff]  ;;  %v1215_v25 = vmax.f32 %v2828_v12, 0.0  ;;  %v1216_v2 = vmax.f32 %v3891_v14, 0.0 }
 0x2b0   :  { %1301 = vst [vmem:[%s3547_s5 + $0x28] sm:$0xff] %v1203_v17  ;;  %v1214_v49 = vmax.f32 %v3890_v51, 0.0  ;;  %1302 = vst [vmem:[%s3547_s5 + $0x30] sm:$0xff] %v1204_v22  ;;  %v1217_v45 = vmax.f32 %v2836_v15, 0.0  ;;  %v1218_v8 = vmax.f32 %v2840_v43, 0.0  ;;  %v1219_v12 = vmax.f32 %v2844_v44, 0.0 }
 0x2b1   :  { %1303 = vst [vmem:[%s3547_s5 + $0x38] sm:$0xff] %v1205_v19  ;;  %1304 = vst [vmem:[%s3547_s5 + $0x40] sm:$0xff] %v1206_v58  ;;  %v1220_v15 = vmax.f32 %v2848_v59, 0.0  ;;  %v1221_v43 = vmax.f32 %v2852_v24, 0.0  ;;  %v1222_v44 = vmax.f32 %v2856_v29, 0.0  ;;  %v1223_v3 = vmax.f32 %v2860_v32, 0.0 }
 0x2b2   :  { %1305 = vst [vmem:[%s3547_s5 + $0x48] sm:$0xff] %v1207_v37  ;;  %1306 = vst [vmem:[%s3547_s5 + $0x50] sm:$0xff] %v1208_v28  ;;  %v1224_v59 = vmax.f32 %v2864_v56, 0.0  ;;  %v1225_v24 = vmax.f32 %v2868_v52, 0.0  ;;  %v1226_v29 = vmax.f32 %v2872_v6, 0.0  ;;  %v1227_v32 = vmax.f32 %v2876_v21, 0.0 }
 0x2b3   :  { %1307 = vst [vmem:[%s3547_s5 + $0x58] sm:$0xff] %v1209_v26  ;;  %1308 = vst [vmem:[%s3547_s5 + $0x60] sm:$0xff] %v1210_v40  ;;  %v1228_v56 = vmax.f32 %v2880_v46, 0.0  ;;  %v1229_v52 = vmax.f32 %v2884_v34, 0.0  ;;  %v1230_v6 = vmax.f32 %v2888_v38, 0.0  ;;  %v1231_v21 = vmax.f32 %v2892_v33, 0.0 }
 0x2b4   :  { %1309 = vst [vmem:[%s3547_s5 + $0x68] sm:$0xff] %v1211_v61  ;;  %1310 = vst [vmem:[%s3547_s5 + $0x70] sm:$0xff] %v1212_v62  ;;  %v1232_v46 = vmax.f32 %v2896_v30, 0.0  ;;  %v1233_v34 = vmax.f32 %v2900_v48, 0.0  ;;  %v1234_v38 = vmax.f32 %v2904_v63, 0.0  ;;  %v1235_v33 = vmax.f32 %v2908_v31, 0.0 }
 0x2b5   :  { %1311 = vst [vmem:[%s3547_s5 + $0x78] sm:$0xff] %v1213_v60  ;;  %1312 = vst [vmem:[%s3547_s5 + $0x80] sm:$0xff] %v1214_v49  ;;  %v1236_v30 = vmax.f32 %v2912_v13, 0.0  ;;  %v1237_v48 = vmax.f32 %v2916_v55, 0.0  ;;  %v1238_v63 = vmax.f32 %v2920_v7, 0.0  ;;  %v1239_v31 = vmax.f32 %v2924_v42, 0.0 }
 0x2b6   :  { %1313 = vst [vmem:[%s3547_s5 + $0x88] sm:$0xff] %v1215_v25  ;;  %1314 = vst [vmem:[%s3547_s5 + $0x90] sm:$0xff] %v1216_v2  ;;  %v1240_v13 = vmax.f32 %v2928_v54, 0.0  ;;  %v1241_v55 = vmax.f32 %v2932_v39, 0.0  ;;  %v1242_v7 = vmax.f32 %v2936_v9, 0.0  ;;  %v3892_v42 = vld [vmem:[#allocation56_spill] sm:$0xff] }
 0x2b7   :  { %1315 = vst [vmem:[%s3547_s5 + $0x98] sm:$0xff] %v1217_v45  ;;  %1316 = vst [vmem:[%s3547_s5 + $0xa0] sm:$0xff] %v1218_v8  ;;  %v1243_v16 = vmax.f32 %v3892_v42, 0.0  ;;  %v3893_v54 = vld [vmem:[#allocation59_spill] sm:$0xff]  ;;  %v3894_v9 = vld [vmem:[#allocation61_spill] sm:$0xff]  ;;  %v1247_v50 = vmax.f32 %v2956_v20, 0.0 }
 0x2b8   :  { %1317 = vst [vmem:[%s3547_s5 + $0xa8] sm:$0xff] %v1219_v12  ;;  %1318 = vst [vmem:[%s3547_s5 + $0xb0] sm:$0xff] %v1220_v15  ;;  %v1244_v39 = vmax.f32 %v3893_v54, 0.0  ;;  %v1245_v0 = vmax.f32 %v3894_v9, 0.0  ;;  %v3895_v22 = vld [vmem:[#allocation63_spill] sm:$0xff]  ;;  %v3896_v17 = vld [vmem:[#allocation66_spill] sm:$0xff] }
 0x2b9   :  { %1319 = vst [vmem:[%s3547_s5 + $0xb8] sm:$0xff] %v1221_v43  ;;  %1320 = vst [vmem:[%s3547_s5 + $0xc0] sm:$0xff] %v1222_v44  ;;  %v1246_v5 = vmax.f32 %v3895_v22, 0.0  ;;  %v1248_v19 = vmax.f32 %v3896_v17, 0.0  ;;  %v1249_v20 = vmax.f32 %v2964_v57, 0.0  ;;  %v3897_v58 = vld [vmem:[#allocation67_spill] sm:$0xff] }
 0x2ba   :  { %1321 = vst [vmem:[%s3547_s5 + $0xc8] sm:$0xff] %v1223_v3  ;;  %1322 = vst [vmem:[%s3547_s5 + $0xd0] sm:$0xff] %v1224_v59  ;;  %v1250_v37 = vmax.f32 %v3897_v58, 0.0  ;;  %v3898_v47 = vld [vmem:[#allocation68_spill] sm:$0xff]  ;;  %v3900_v40 = vld [vmem:[#allocation15_spill] sm:$0xff]  ;;  %v1255_v60 = vmax.f32 %v2988_v36, 0.0 }
 0x2bb   :  { %1323 = vst [vmem:[%s3547_s5 + $0xd8] sm:$0xff] %v1225_v24  ;;  %1324 = vst [vmem:[%s3547_s5 + $0xe0] sm:$0xff] %v1226_v29  ;;  %v1251_v28 = vmax.f32 %v3898_v47, 0.0  ;;  %v3899_v57 = vld [vmem:[#allocation12_spill] sm:$0xff]  ;;  %v1253_v61 = vmax.f32 %v3900_v40, 0.0  ;;  %v3901_v23 = vld [vmem:[#allocation18_spill] sm:$0xff] }
 0x2bc   :  { %1325 = vst [vmem:[%s3547_s5 + $0xe8] sm:$0xff] %v1227_v32  ;;  %1326 = vst [vmem:[%s3547_s5 + $0xf0] sm:$0xff] %v1228_v56  ;;  %v1252_v26 = vmax.f32 %v3899_v57, 0.0  ;;  %v1254_v62 = vmax.f32 %v3901_v23, 0.0  ;;  %v3902_v51 = vld [vmem:[#allocation21_spill] sm:$0xff]  ;;  %v1257_v36 = vmax.f32 %v2996_v4, 0.0 }
 0x2bd   :  { %1327 = vst [vmem:[%s3547_s5 + $0xf8] sm:$0xff] %v1229_v52  ;;  %1328 = vst [vmem:[%s3547_s5 + $0x100] sm:$0xff] %v1230_v6  ;;  %v1256_v49 = vmax.f32 %v3902_v51, 0.0  ;;  %v3903_v25 = vld [vmem:[#allocation24_spill] sm:$0xff]  ;;  %v1259_v2 = vmax.f32 %v3004_v10, 0.0  ;;  %v3904_v4 = vld [vmem:[#allocation27_spill] sm:$0xff] }
 0x2be   :  { %1329 = vst [vmem:[%s3547_s5 + $0x108] sm:$0xff] %v1231_v21  ;;  %1330 = vst [vmem:[%s3547_s5 + $0x110] sm:$0xff] %v1232_v46  ;;  %v1258_v14 = vmax.f32 %v3903_v25, 0.0  ;;  %v1260_v45 = vmax.f32 %v3904_v4, 0.0  ;;  %v3905_v8 = vld [vmem:[#allocation30_spill] sm:$0xff]  ;;  %v3906_v12 = vld [vmem:[#allocation45_spill] sm:$0xff] }
 0x2bf   :  { %1331 = vst [vmem:[%s3547_s5 + $0x118] sm:$0xff] %v1233_v34  ;;  %1332 = vst [vmem:[%s3547_s5 + $0x120] sm:$0xff] %v1234_v38  ;;  %v1261_v10 = vmax.f32 %v3905_v8, 0.0  ;;  %v1262_v15 = vmax.f32 %v3906_v12, 0.0  ;;  %v3907_v43 = vld [vmem:[#allocation48_spill] sm:$0xff]  ;;  %v3908_v3 = vld [vmem:[#allocation51_spill] sm:$0xff] }
 0x2c0   :  { %1333 = vst [vmem:[%s3547_s5 + $0x128] sm:$0xff] %v1235_v33  ;;  %1334 = vst [vmem:[%s3547_s5 + $0x130] sm:$0xff] %v1236_v30  ;;  %v1263_v44 = vmax.f32 %v3907_v43, 0.0  ;;  %v1264_v59 = vmax.f32 %v3908_v3, 0.0  ;;  %v3909_v24 = vld [vmem:[#allocation54_spill] sm:$0xff]  ;;  %v3910_v32 = vld [vmem:[#allocation57_spill] sm:$0xff] }
 0x2c1   :  { %1335 = vst [vmem:[%s3547_s5 + $0x138] sm:$0xff] %v1237_v48  ;;  %1336 = vst [vmem:[%s3547_s5 + $0x140] sm:$0xff] %v1238_v63  ;;  %v1265_v29 = vmax.f32 %v3909_v24, 0.0  ;;  %v1266_v56 = vmax.f32 %v3910_v32, 0.0  ;;  %v3911_v52 = vld [vmem:[#allocation60_spill] sm:$0xff]  ;;  %v3912_v21 = vld [vmem:[#allocation62_spill] sm:$0xff] }
 0x2c2   :  { %1337 = vst [vmem:[%s3547_s5 + $0x148] sm:$0xff] %v1239_v31  ;;  %1338 = vst [vmem:[%s3547_s5 + $0x150] sm:$0xff] %v1240_v13  ;;  %v1267_v6 = vmax.f32 %v3911_v52, 0.0  ;;  %v1268_v46 = vmax.f32 %v3912_v21, 0.0  ;;  %v3913_v34 = vld [vmem:[#allocation64_spill] sm:$0xff]  ;;  %v3914_v33 = vld [vmem:[#allocation65_spill] sm:$0xff] }
 0x2c3   :  { %1339 = vst [vmem:[%s3547_s5 + $0x158] sm:$0xff] %v1241_v55  ;;  %1340 = vst [vmem:[%s3547_s5 + $0x160] sm:$0xff] %v1242_v7  ;;  %v1269_v38 = vmax.f32 %v3913_v34, 0.0  ;;  %v1270_v30 = vmax.f32 %v3914_v33, 0.0  ;;  %v3915_v48 = vld [vmem:[#allocation32_spill] sm:$0xff]  ;;  %v3916_v31 = vld [vmem:[#allocation34_spill] sm:$0xff] }
 0x2c4   :  { %1341 = vst [vmem:[%s3547_s5 + $0x168] sm:$0xff] %v1243_v16  ;;  %1342 = vst [vmem:[%s3547_s5 + $0x170] sm:$0xff] %v1244_v39  ;;  %v1271_v63 = vmax.f32 %v3915_v48, 0.0  ;;  %v1272_v13 = vmax.f32 %v3916_v31, 0.0  ;;  %v3917_v55 = vld [vmem:[#allocation36_spill] sm:$0xff]  ;;  %v3918_v42 = vld [vmem:[#allocation38_spill] sm:$0xff] }
 0x2c5   :  { %1343 = vst [vmem:[%s3547_s5 + $0x178] sm:$0xff] %v1245_v0  ;;  %1344 = vst [vmem:[%s3547_s5 + $0x180] sm:$0xff] %v1246_v5  ;;  %v1273_v7 = vmax.f32 %v3917_v55, 0.0  ;;  %v1274_v16 = vmax.f32 %v3918_v42, 0.0  ;;  %v3919_v54 = vld [vmem:[#allocation40_spill] sm:$0xff]  ;;  %v3920_v9 = vld [vmem:[#allocation42_spill] sm:$0xff] }
 0x2c6   :  { %1345 = vst [vmem:[%s3547_s5 + $0x188] sm:$0xff] %v1247_v50  ;;  %1346 = vst [vmem:[%s3547_s5 + $0x190] sm:$0xff] %v1248_v19  ;;  %v1275_v39 = vmax.f32 %v3919_v54, 0.0  ;;  %v1276_v0 = vmax.f32 %v3920_v9, 0.0  ;;  %v3921_v22 = vld [vmem:[#allocation2_spill] sm:$0xff]  ;;  %v3922_v50 = vld [vmem:[#allocation3_spill] sm:$0xff] }
 0x2c7   :  { %1347 = vst [vmem:[%s3547_s5 + $0x198] sm:$0xff] %v1249_v20  ;;  %1348 = vst [vmem:[%s3547_s5 + $0x1a0] sm:$0xff] %v1250_v37  ;;  %v1277_v5 = vmax.f32 %v3921_v22, 0.0  ;;  %v1278_v17 = vmax.f32 %v3922_v50, 0.0  ;;  %v3923_v19 = vld [vmem:[#allocation4_spill] sm:$0xff]  ;;  %v3924_v58 = vld [vmem:[#allocation5_spill] sm:$0xff] }
 0x2c8   :  { %1349 = vst [vmem:[%s3547_s5 + $0x1a8] sm:$0xff] %v1251_v28  ;;  %1350 = vst [vmem:[%s3547_s5 + $0x1b0] sm:$0xff] %v1252_v26  ;;  %v1279_v20 = vmax.f32 %v3923_v19, 0.0  ;;  %v1280_v37 = vmax.f32 %v3924_v58, 0.0  ;;  %v1281_v47 = vmax.f32 %v3092_v11, 0.0  ;;  %v3925_v28 = vld [vmem:[#allocation6_spill] sm:$0xff] }
 0x2c9   :  { %1351 = vst [vmem:[%s3547_s5 + $0x1b8] sm:$0xff] %v1253_v61  ;;  %1352 = vst [vmem:[%s3547_s5 + $0x1c0] sm:$0xff] %v1254_v62  ;;  %v1282_v57 = vmax.f32 %v3925_v28, 0.0  ;;  %v1283_v26 = vmax.f32 %v3100_v53, 0.0  ;;  %v3926_v11 = vld [vmem:[#allocation8_spill] sm:$0xff]  ;;  %v1285_v53 = vmax.f32 %v3108_v1, 0.0 }
 0x2ca   :  { %1353 = vst [vmem:[%s3547_s5 + $0x1c8] sm:$0xff] %v1255_v60  ;;  %1354 = vst [vmem:[%s3547_s5 + $0x1d0] sm:$0xff] %v1256_v49  ;;  %v1284_v40 = vmax.f32 %v3926_v11, 0.0  ;;  %v3927_v61 = vld [vmem:[#allocation10_spill] sm:$0xff]  ;;  %v1287_v62 = vmax.f32 %v3116_v27, 0.0  ;;  %v3928_v1 = vld [vmem:[#allocation7_spill] sm:$0xff] }
 0x2cb   :  { %1355 = vst [vmem:[%s3547_s5 + $0x1d8] sm:$0xff] %v1257_v36  ;;  %1356 = vst [vmem:[%s3547_s5 + $0x1e0] sm:$0xff] %v1258_v14  ;;  %v1286_v23 = vmax.f32 %v3927_v61, 0.0  ;;  %v1288_v60 = vmax.f32 %v3928_v1, 0.0  ;;  %v1289_v27 = vmax.f32 %v3124_v18, 0.0  ;;  %v3929_v51 = vld [vmem:[#allocation13_spill] sm:$0xff] }
 0x2cc   :  { %1357 = vst [vmem:[%s3547_s5 + $0x1e8] sm:$0xff] %v1259_v2  ;;  %1358 = vst [vmem:[%s3547_s5 + $0x1f0] sm:$0xff] %v1260_v45  ;;  %v1290_v49 = vmax.f32 %v3929_v51, 0.0  ;;  %v3930_v36 = vld [vmem:[#allocation9_spill] sm:$0xff]  ;;  %v3931_v18 = vld [vmem:[#allocation16_spill] sm:$0xff]  ;;  %v1294_v45 = vmax.f32 %v3144_v41, 0.0 }
 0x2cd   :  { %1359 = vst [vmem:[%s3547_s5 + $0x1f8] sm:$0xff] %v1261_v10  ;;  %1360 = vst [vmem:[%s3547_s5 + $0x200] sm:$0xff] %v1262_v15  ;;  %v1291_v25 = vmax.f32 %v3930_v36, 0.0  ;;  %v1292_v14 = vmax.f32 %v3931_v18, 0.0  ;;  %v3932_v2 = vld [vmem:[#allocation19_spill] sm:$0xff]  ;;  %v1295_v8 = vmax.f32 %v3148_v35, 0.0 }
 0x2ce   :  { %1361 = vst [vmem:[%s3547_s5 + $0x208] sm:$0xff] %v1263_v44  ;;  %1362 = vst [vmem:[%s3547_s5 + $0x210] sm:$0xff] %v1264_v59  ;;  %v1293_v4 = vmax.f32 %v3932_v2, 0.0 }
 0x2cf   :  { %1363 = vst [vmem:[%s3547_s5 + $0x218] sm:$0xff] %v1265_v29  ;;  %1364 = vst [vmem:[%s3547_s5 + $0x220] sm:$0xff] %v1266_v56 }
 0x2d0   :  { %1365 = vst [vmem:[%s3547_s5 + $0x228] sm:$0xff] %v1267_v6  ;;  %1366 = vst [vmem:[%s3547_s5 + $0x230] sm:$0xff] %v1268_v46 }
 0x2d1   :  { %1367 = vst [vmem:[%s3547_s5 + $0x238] sm:$0xff] %v1269_v38  ;;  %1368 = vst [vmem:[%s3547_s5 + $0x240] sm:$0xff] %v1270_v30 }
 0x2d2   :  { %1369 = vst [vmem:[%s3547_s5 + $0x248] sm:$0xff] %v1271_v63  ;;  %1370 = vst [vmem:[%s3547_s5 + $0x250] sm:$0xff] %v1272_v13 }
 0x2d3   :  { %1371 = vst [vmem:[%s3547_s5 + $0x258] sm:$0xff] %v1273_v7  ;;  %1372 = vst [vmem:[%s3547_s5 + $0x260] sm:$0xff] %v1274_v16 }
 0x2d4   :  { %1373 = vst [vmem:[%s3547_s5 + $0x268] sm:$0xff] %v1275_v39  ;;  %1374 = vst [vmem:[%s3547_s5 + $0x270] sm:$0xff] %v1276_v0 }
 0x2d5   :  { %1375 = vst [vmem:[%s3547_s5 + $0x278] sm:$0xff] %v1277_v5  ;;  %1376 = vst [vmem:[%s3547_s5 + $0x280] sm:$0xff] %v1278_v17 }
 0x2d6   :  { %1377 = vst [vmem:[%s3547_s5 + $0x288] sm:$0xff] %v1279_v20  ;;  %1378 = vst [vmem:[%s3547_s5 + $0x290] sm:$0xff] %v1280_v37 }
 0x2d7   :  { %1379 = vst [vmem:[%s3547_s5 + $0x298] sm:$0xff] %v1281_v47  ;;  %1380 = vst [vmem:[%s3547_s5 + $0x2a0] sm:$0xff] %v1282_v57 }
 0x2d8   :  { %1381 = vst [vmem:[%s3547_s5 + $0x2a8] sm:$0xff] %v1283_v26  ;;  %1382 = vst [vmem:[%s3547_s5 + $0x2b0] sm:$0xff] %v1284_v40 }
 0x2d9   :  { %1383 = vst [vmem:[%s3547_s5 + $0x2b8] sm:$0xff] %v1285_v53  ;;  %1384 = vst [vmem:[%s3547_s5 + $0x2c0] sm:$0xff] %v1286_v23 }
 0x2da   :  { %1385 = vst [vmem:[%s3547_s5 + $0x2c8] sm:$0xff] %v1287_v62  ;;  %1386 = vst [vmem:[%s3547_s5 + $0x2d0] sm:$0xff] %v1288_v60 }
 0x2db   :  { %1387 = vst [vmem:[%s3547_s5 + $0x2d8] sm:$0xff] %v1289_v27  ;;  %1388 = vst [vmem:[%s3547_s5 + $0x2e0] sm:$0xff] %v1290_v49 }
 0x2dc   :  { %1389 = vst [vmem:[%s3547_s5 + $0x2e8] sm:$0xff] %v1291_v25  ;;  %1390 = vst [vmem:[%s3547_s5 + $0x2f0] sm:$0xff] %v1292_v14 }
 0x2dd   :  { %1391 = vst [vmem:[%s3547_s5 + $0x2f8] sm:$0xff] %v1293_v4  ;;  %1392 = vst [vmem:[%s3547_s5 + $0x300] sm:$0xff] %v1294_v45 }
 0x2de   :  { %1393 = vst [vmem:[%s3547_s5 + $0x308] sm:$0xff] %v1295_v8 }

</bundles_post_ra>
